<compile_context>
chip_gen: v7x
topology: tpu7x:2x2x1
jax: 0.10.0
libtpu: 0.0.40
codegen_flags: <defaults>
</compile_context>

<pallas_src>
import math
from functools import partial

import numpy as np
import jax
import jax.numpy as jnp
from jax import lax
from jax.experimental import pallas as pl
from jax.experimental.pallas import tpu as pltpu


# --------------------------------------------------------------------------
# Small helpers
# --------------------------------------------------------------------------
def _round_up(x, m):
    return ((x + m - 1) // m) * m


def _num_tensorcores():
    try:
        return int(getattr(jax.devices()[0], "num_cores", 1) or 1)
    except Exception:
        return 1


def upsample_nearest_3d(x, scale_factor):
    """Exact replica of Upsample_Custom3d_nearest (used by the reference)."""
    d_in, h_in, w_in = x.shape[-3], x.shape[-2], x.shape[-1]
    sd, sh, sw = scale_factor[-3], scale_factor[-2], scale_factor[-1]
    d_idx = (np.ceil(np.arange(1, 1 + int(d_in * sd)) / sd) - 1).astype(int)
    h_idx = (np.ceil(np.arange(1, 1 + int(h_in * sh)) / sh) - 1).astype(int)
    w_idx = (np.ceil(np.arange(1, 1 + int(w_in * sw)) / sw) - 1).astype(int)
    x = jnp.take(x, jnp.asarray(d_idx), axis=2)
    x = jnp.take(x, jnp.asarray(h_idx), axis=3)
    x = jnp.take(x, jnp.asarray(w_idx), axis=4)
    return x


# --------------------------------------------------------------------------
# Host-side, one-time weight re-layout
#   * H taps + channels folded into the contraction (K) dim ("banded" weights)
#   * 3 depth taps folded into the output (N) dim (3 column blocks)
#   * weights split into the inputs1 (c1) and inputs2 (c2) channel groups so
#     the channel concat never has to be materialized
# --------------------------------------------------------------------------
def prepare_fused_params(params, c1, height):
    w1 = np.asarray(params["w1"], np.float32)   # (3, 3, Cin, Cout)  [kd, kh, ci, co]
    w2 = np.asarray(params["w2"], np.float32)   # (3, 3, Cout, Cout)
    wd = np.asarray(params["wd"], np.float32)   # (Cin, Cout)
    b1 = np.asarray(params["b1"], np.float32)
    b2 = np.asarray(params["b2"], np.float32)
    bd = np.asarray(params["bd"], np.float32)

    cin, cout = wd.shape
    c2 = cin - c1
    lane_mult = 128 // math.gcd(height, 128)     # => height * pad % 128 == 0
    coutp = _round_up(cout, lane_mult)
    c1p = _round_up(c1, lane_mult)
    c2p = _round_up(c2, lane_mult)
    hco = height * coutp

    # conv1 / conv2 banded weights, one (K, hco) block per depth tap kd.
    w1a = np.zeros((3, height * c1p, hco), np.float32)   # inputs1 channels
    w1b = np.zeros((3, height * c2p, hco), np.float32)   # upsampled inputs2 channels
    w2b = np.zeros((3, hco, hco), np.float32)
    for kd in range(3):
        for h_out in range(height):
            co_sl = slice(h_out * coutp, h_out * coutp + cout)
            for kh in range(3):
                h_in = h_out + kh - 1
                if not (0 <= h_in < height):
                    continue                     # H zero padding == dropped rows
                w1a[kd, h_in * c1p:h_in * c1p + c1, co_sl] = w1[kd, kh, :c1, :]
                w1b[kd, h_in * c2p:h_in * c2p + c2, co_sl] = w1[kd, kh, c1:, :]
                w2b[kd, h_in * coutp:h_in * coutp + cout, co_sl] = w2[kd, kh]

    # 1x1 residual conv: block-diagonal over H positions, split per group.
    wda = np.zeros((height * c1p, hco), np.float32)
    wdb = np.zeros((height * c2p, hco), np.float32)
    for h in range(height):
        co_sl = slice(h * coutp, h * coutp + cout)
        wda[h * c1p:h * c1p + c1, co_sl] = wd[:c1]
        wdb[h * c2p:h * c2p + c2, co_sl] = wd[c1:]

    def cat3(w):                                 # fold the 3 depth taps into N
        return np.concatenate([w[0], w[1], w[2]], axis=1)

    def tile_bias(b):
        return np.tile(np.pad(b, (0, coutp - cout)), height)[None, :]

    fused = dict(
        w1a=jnp.asarray(cat3(w1a), jnp.bfloat16),   # (H*c1p,   3*H*coutp)
        w1b=jnp.asarray(cat3(w1b), jnp.bfloat16),   # (H*c2p,   3*H*coutp)
        w2c=jnp.asarray(cat3(w2b), jnp.bfloat16),   # (H*coutp, 3*H*coutp)
        wda=jnp.asarray(wda, jnp.bfloat16),         # (H*c1p,   H*coutp)
        wdb=jnp.asarray(wdb, jnp.bfloat16),         # (H*c2p,   H*coutp)
        b1t=jnp.asarray(tile_bias(b1), jnp.float32),
        b2t=jnp.asarray(tile_bias(b2), jnp.float32),
        bdt=jnp.asarray(tile_bias(bd), jnp.float32),
    )
    return fused, dict(cout=cout, coutp=coutp, c1p=c1p, c2p=c2p)


# --------------------------------------------------------------------------
# Per-generation slab-block selection
# --------------------------------------------------------------------------
def _pick_slab_block(n_slabs, depth, depth2, hc1, hc2, hco, num_cores):
    """Slabs per grid step (one slab = one (n, w) plane).

    B is a multiple of 8 so every in-kernel reshape is an aligned, free
    relayout.  Target M = B*depth ~128 rows: fills the MXU while keeping the
    f32 (M, 3*H*coutp) tap-folded result inside the 64-vreg file; the slab
    grid provides the further row chunking (review item on vreg pressure).
    Single-TC parts (v5e/v6e) are happy with grid=1; on multi-TC parts keep
    >= 2 grid steps per core when there is enough work.  A VMEM clamp keeps
    the double-buffered blocks well inside the v7x 64 MiB budget.
    """
    target_rows = 128
    b = max(8, (target_rows // max(depth, 1)) // 8 * 8)
    per_slab = 2 * (depth * hc1 * 4 + depth2 * hc2 * 4 + depth * hco * 4)
    b = min(b, max(8, (8 * 1024 * 1024 // max(per_slab, 1)) // 8 * 8))
    b = min(b, _round_up(n_slabs, 8))
    if num_cores > 1:
        while b > 8 and -(-n_slabs // b) < 2 * num_cores:
            b -= 8
    return b


# --------------------------------------------------------------------------
# Pallas kernel: depth-upsample + concat + conv1(3x3)+relu -> conv2(3x3)
#                + 1x1 residual ; final relu   (no scratch, no halo padding)
# --------------------------------------------------------------------------
def _fused_conv_kernel(x1_ref, x2_ref, w1a_ref, w1b_ref, b1_ref, w2_ref, b2_ref,
                       wda_ref, wdb_ref, bd_ref, o_ref, *, sd):
    # x1_ref : (D,  B, H*c1p)      f32  inputs1 slab block (depth-leading layout)
    # x2_ref : (D2, B, H*c2p)      f32  inputs2 block, H/W already upsampled,
    #                                   depth still at low resolution (D = sd*D2)
    # w1a/w1b: (H*cxp, 3*H*coutp)  bf16 conv1; H taps in K, depth taps in N
    # w2     : (H*coutp, 3*H*coutp) bf16 conv2; same folding
    # wda/wdb: (H*cxp, H*coutp)    bf16 1x1 residual conv (block-diag over H)
    # b*     : (1, H*coutp)        f32  biases tiled over H
    # o_ref  : (D, B, H*coutp)     f32  lane-dense output
    D, B, HC1 = x1_ref.shape
    D2, _, HC2 = x2_ref.shape
    HCo = o_ref.shape[-1]
    M = D * B
    assert D2 * sd == D, "depth upfactor inconsistent with the block shapes"

    # Load once, cast to bf16 in-kernel.  The nearest depth-upsample of the
    # low-resolution input is a free leading-dim broadcast (never touches HBM).
    x1 = x1_ref[...].reshape(M, HC1).astype(jnp.bfloat16)
    x2u = jnp.broadcast_to(x2_ref[...][:, None, :, :], (D2, sd, B, HC2))
    x2u = x2u.reshape(M, HC2).astype(jnp.bfloat16)

    zero_row = jnp.zeros((1, B, HCo), jnp.float32)

    def comb(z):
        # out[d] = z[d-1, blk0] + z[d, blk1] + z[d+1, blk2]   (zero depth halo)
        # Shifts along the leading (untiled) depth dim are free concatenates.
        z = z.reshape(D, B, 3 * HCo)
        mid = z[:, :, HCo:2 * HCo]
        down = jnp.concatenate([zero_row, z[:D - 1, :, :HCo]], axis=0)
        up = jnp.concatenate([z[1:, :, 2 * HCo:], zero_row], axis=0)
        return down + mid + up

    # ---- conv1 (3,3,1): one dot per channel group, N = 3*H*coutp ----
    z1 = (jnp.dot(x1, w1a_ref[...], preferred_element_type=jnp.float32) +
          jnp.dot(x2u, w1b_ref[...], preferred_element_type=jnp.float32))
    y1 = jnp.maximum(comb(z1) + b1_ref[...], 0.0)                 # (D,B,HCo) f32

    # ---- conv2 (3,3,1): bf16 MXU operands, f32 accumulation ----
    z2 = jnp.dot(y1.reshape(M, HCo).astype(jnp.bfloat16), w2_ref[...],
                 preferred_element_type=jnp.float32)
    y2 = comb(z2) + b2_ref[...]

    # ---- residual 1x1 conv on the (implicitly concatenated) input ----
    res = (jnp.dot(x1, wda_ref[...], preferred_element_type=jnp.float32) +
           jnp.dot(x2u, wdb_ref[...], preferred_element_type=jnp.float32))
    res = res.reshape(D, B, HCo) + bd_ref[...]

    o_ref[...] = jnp.maximum(y2 + res, 0.0)


# --------------------------------------------------------------------------
# Wrapper
# --------------------------------------------------------------------------
@partial(jax.jit, static_argnames=("sd", "cout", "coutp", "c1p", "c2p", "B", "NWp"))
def _forward_impl(inputs1, inputs2, h_idx, w_idx,
                  w1a, w1b, b1t, w2c, b2t, wda, wdb, bdt,
                  *, sd, cout, coutp, c1p, c2p, B, NWp):
    N, C1, D, H, W = inputs1.shape
    C2, D2 = inputs2.shape[1], inputs2.shape[2]
    NW = N * W
    HC1, HC2, HCo = H * c1p, H * c2p, H * coutp
    grid = NWp // B

    # inputs1 -> (D, NWp, H*c1p) slab layout (single fused XLA pass).
    # TODO(synk): fuse this transpose (and the one below) into the kernel via an
    # index_map-driven gather to remove the last activation-sized HBM round trip.
    x1 = jnp.transpose(inputs1, (2, 0, 4, 3, 1))                  # (D,N,W,H,C1)
    x1 = jnp.pad(x1, ((0, 0),) * 4 + ((0, c1p - C1),))
    x1 = x1.reshape(D, NW, HC1)
    x1 = jnp.pad(x1, ((0, 0), (0, NWp - NW), (0, 0))).astype(jnp.float32)

    # inputs2: nearest upsample of H/W only (still at low depth, so sd x smaller
    # than the full upsample), then slab layout.  Depth repeat + channel concat
    # happen inside the kernel, so neither the full-resolution upsample nor the
    # concatenated tensor is ever materialized in HBM.
    x2 = jnp.take(inputs2, h_idx, axis=3)
    x2 = jnp.take(x2, w_idx, axis=4)
    x2 = jnp.transpose(x2, (2, 0, 4, 3, 1))                       # (D2,N,W,H,C2)
    x2 = jnp.pad(x2, ((0, 0),) * 4 + ((0, c2p - C2),))
    x2 = x2.reshape(D2, NW, HC2)
    x2 = jnp.pad(x2, ((0, 0), (0, NWp - NW), (0, 0))).astype(jnp.float32)

    out = pl.pallas_call(
        partial(_fused_conv_kernel, sd=sd),
        out_shape=jax.ShapeDtypeStruct((D, NWp, HCo), jnp.float32),
        grid_spec=pltpu.PrefetchScalarGridSpec(
            num_scalar_prefetch=0,
            grid=(grid,),
            in_specs=[
                pl.BlockSpec((D, B, HC1), lambda i: (0, i, 0)),
                pl.BlockSpec((D2, B, HC2), lambda i: (0, i, 0)),
                pl.BlockSpec((HC1, 3 * HCo), lambda i: (0, 0)),
                pl.BlockSpec((HC2, 3 * HCo), lambda i: (0, 0)),
                pl.BlockSpec((1, HCo), lambda i: (0, 0)),
                pl.BlockSpec((HCo, 3 * HCo), lambda i: (0, 0)),
                pl.BlockSpec((1, HCo), lambda i: (0, 0)),
                pl.BlockSpec((HC1, HCo), lambda i: (0, 0)),
                pl.BlockSpec((HC2, HCo), lambda i: (0, 0)),
                pl.BlockSpec((1, HCo), lambda i: (0, 0)),
            ],
            out_specs=pl.BlockSpec((D, B, HCo), lambda i: (0, i, 0)),
        ),
        compiler_params=pltpu.CompilerParams(
            dimension_semantics=("parallel",),
            vmem_limit_bytes=32 * 1024 * 1024,   # ~2 MiB used; safe on v5e/v6e/v7x
        ),
    )(x1, x2, w1a, w1b, b1t, w2c, b2t, wda, wdb, bdt)

    # (D, NWp, H*coutp) -> (N, Cout, D, H, W); drop slab / channel padding.
    out = out[:, :NW, :].reshape(D, N, W, H, coutp)[..., :cout]
    return jnp.transpose(out, (1, 4, 0, 3, 2))


def unet3d_up2_forward(inputs1, inputs2, params, upfactor):
    """Forward of unet3dUp2modified (is_deconv=False, is_batchnorm=False,
    is_residual=True, dropout=0.0)."""
    N, c1, D, H, W = inputs1.shape
    _, c2, D2, H2, W2 = inputs2.shape
    sd, sh, sw = upfactor[-3], upfactor[-2], upfactor[-1]
    assert float(sd).is_integer() and int(sd) * D2 == D, (
        "depth upsample factor must be an integer consistent with the inputs")
    sd = int(sd)
    assert params["wd"].shape[0] == c1 + c2

    # Exact Upsample_Custom3d_nearest index maps for height / width (applied in
    # XLA on the small low-depth tensor); depth handled inside the kernel.
    h_idx = (np.ceil(np.arange(1, 1 + int(H2 * sh)) / sh) - 1).astype(np.int32)
    w_idx = (np.ceil(np.arange(1, 1 + int(W2 * sw)) / sw) - 1).astype(np.int32)
    assert h_idx.size == H and w_idx.size == W, "inputs1/inputs2 shape mismatch"

    fused, dims = prepare_fused_params(params, c1, H)

    NW = N * W
    B = _pick_slab_block(NW, D, D2, H * dims["c1p"], H * dims["c2p"],
                         H * dims["coutp"], _num_tensorcores())
    NWp = _round_up(NW, B)

    return _forward_impl(
        inputs1, inputs2, jnp.asarray(h_idx), jnp.asarray(w_idx),
        fused["w1a"], fused["w1b"], fused["b1t"], fused["w2c"], fused["b2t"],
        fused["wda"], fused["wdb"], fused["bdt"],
        sd=sd, cout=dims["cout"], coutp=dims["coutp"],
        c1p=dims["c1p"], c2p=dims["c2p"], B=B, NWp=NWp)


# --------------------------------------------------------------------------
# Pure-JAX reference (lax.conv) for validation
# --------------------------------------------------------------------------
def reference_forward(inputs1, inputs2, params, upfactor,
                      match_kernel_rounding=True):
    up2 = upsample_nearest_3d(inputs2, upfactor)
    x = jnp.concatenate([inputs1, up2], axis=1)

    def rnd(a):   # mimic the kernel's bf16 MXU operands (f32 accumulation)
        a = jnp.asarray(a)
        return (a.astype(jnp.bfloat16).astype(jnp.float32)
                if match_kernel_rounding else a)

    x = rnd(x)
    w1, w2, wd = rnd(params["w1"]), rnd(params["w2"]), rnd(params["wd"])

    def conv3d(v, w_oidhw, b, pad):
        y = lax.conv_general_dilated(
            v, w_oidhw, window_strides=(1, 1, 1),
            padding=[(p, p) for p in pad],
            dimension_numbers=("NCDHW", "OIDHW", "NCDHW"),
            precision=lax.Precision.HIGHEST)
        return y + b[None, :, None, None, None]

    w1_t = jnp.transpose(w1, (3, 2, 0, 1))[..., None]   # (O, I, kD, kH, 1)
    w2_t = jnp.transpose(w2, (3, 2, 0, 1))[..., None]
    wd_t = wd.T[:, :, None, None, None]                 # (O, I, 1, 1, 1)

    y1 = jax.nn.relu(conv3d(x, w1_t, params["b1"], (1, 1, 0)))
    y1 = rnd(y1)                                        # kernel casts y1 to bf16 too
    y2 = conv3d(y1, w2_t, params["b2"], (1, 1, 0))
    res = conv3d(x, wd_t, params["bd"], (0, 0, 0))
    return jax.nn.relu(y2 + res)


# --------------------------------------------------------------------------
if __name__ == "__main__":
    N = 2
    Clow, Ccurr = 8, 4            # lowlayer_channels, currlayer_channels
    D, H, W = 16, 16, 4
    upfactor = (2, 2, 1)
    Cin = Clow + Ccurr

    key = jax.random.PRNGKey(0)
    ks = jax.random.split(key, 8)
    params = {
        "w1": jax.random.normal(ks[0], (3, 3, Cin, Ccurr), jnp.float32) * 0.1,
        "b1": jax.random.normal(ks[1], (Ccurr,), jnp.float32) * 0.1,
        "w2": jax.random.normal(ks[2], (3, 3, Ccurr, Ccurr), jnp.float32) * 0.1,
        "b2": jax.random.normal(ks[3], (Ccurr,), jnp.float32) * 0.1,
        "wd": jax.random.normal(ks[4], (Cin, Ccurr), jnp.float32) * 0.1,
        "bd": jax.random.normal(ks[5], (Ccurr,), jnp.float32) * 0.1,
    }

    inputs1 = jax.random.normal(ks[6], (N, Ccurr, D, H, W), jnp.float32)
    inputs2 = jax.random.normal(
        ks[7],
        (N, Clow, D // upfactor[0], H // upfactor[1], W // upfactor[2]),
        jnp.float32)

    out = jax.block_until_ready(
        unet3d_up2_forward(inputs1, inputs2, params, upfactor))
    ref = jax.block_until_ready(
        reference_forward(inputs1, inputs2, params, upfactor))

    assert out.shape == (N, Ccurr, D, H, W)
    # All MXU operands (x, w1, wd, w2 and the conv2 input y1) are bf16 and are
    # rounded identically in the reference; the remaining mismatch is f32
    # accumulation-order noise plus rare one-ulp bf16 straddles on y1.
    np.testing.assert_allclose(np.asarray(out), np.asarray(ref),
                               rtol=5e-3, atol=5e-3)

    # TODO(synk): BatchNorm (is_batchnorm=True), Dropout (dropout>0) and the
    # ConvTranspose3d (is_deconv=True) branches are not exercised in this
    # configuration (is_batchnorm=False, dropout=0.0, is_deconv=False).
    print("KERNEL_OK")
</pallas_src>

<mosaic_0001>
module attributes {stable_mosaic.version = 11 : i64} {
  func.func @_fused_conv_kernel(%arg0: i32, %arg1: memref<16x8x128xf32, #tpu.memory_space<vmem>>, %arg2: memref<8x8x128xf32, #tpu.memory_space<vmem>>, %arg3: memref<128x384xbf16, #tpu.memory_space<vmem>>, %arg4: memref<128x384xbf16, #tpu.memory_space<vmem>>, %arg5: memref<1x128xf32, #tpu.memory_space<vmem>>, %arg6: memref<128x384xbf16, #tpu.memory_space<vmem>>, %arg7: memref<1x128xf32, #tpu.memory_space<vmem>>, %arg8: memref<128x128xbf16, #tpu.memory_space<vmem>>, %arg9: memref<128x128xbf16, #tpu.memory_space<vmem>>, %arg10: memref<1x128xf32, #tpu.memory_space<vmem>>, %arg11: memref<16x8x128xf32, #tpu.memory_space<vmem>>) attributes {dimension_semantics = [#tpu.dimension_semantics<parallel>], iteration_bounds = array<i64: 1>, scalar_prefetch = 0 : i64, scratch_operands = 0 : i64, tpu.core_type = #tpu.core_type<tc>, window_params = [{transform_indices = @transform_0, window_bounds = array<i64: 16, 8, 128>}, {transform_indices = @transform_1, window_bounds = array<i64: 8, 8, 128>}, {pipeline_mode = #tpu.pipeline_mode<synchronous>, transform_indices = @transform_2, window_bounds = array<i64: 128, 384>}, {pipeline_mode = #tpu.pipeline_mode<synchronous>, transform_indices = @transform_3, window_bounds = array<i64: 128, 384>}, {pipeline_mode = #tpu.pipeline_mode<synchronous>, transform_indices = @transform_4, window_bounds = array<i64: 1, 128>}, {pipeline_mode = #tpu.pipeline_mode<synchronous>, transform_indices = @transform_5, window_bounds = array<i64: 128, 384>}, {pipeline_mode = #tpu.pipeline_mode<synchronous>, transform_indices = @transform_6, window_bounds = array<i64: 1, 128>}, {pipeline_mode = #tpu.pipeline_mode<synchronous>, transform_indices = @transform_7, window_bounds = array<i64: 128, 128>}, {pipeline_mode = #tpu.pipeline_mode<synchronous>, transform_indices = @transform_8, window_bounds = array<i64: 128, 128>}, {pipeline_mode = #tpu.pipeline_mode<synchronous>, transform_indices = @transform_9, window_bounds = array<i64: 1, 128>}, {transform_indices = @transform_10, window_bounds = array<i64: 16, 8, 128>}]} {
    %c0 = arith.constant 0 : index
    %c0_0 = arith.constant 0 : index
    %c0_1 = arith.constant 0 : index
    %0 = vector.load %arg1[%c0, %c0_0, %c0_1] : memref<16x8x128xf32, #tpu.memory_space<vmem>>, vector<16x8x128xf32>
    %1 = vector.shape_cast %0 : vector<16x8x128xf32> to vector<128x128xf32>
    %2 = arith.truncf %1 : vector<128x128xf32> to vector<128x128xbf16>
    %c0_2 = arith.constant 0 : index
    %c0_3 = arith.constant 0 : index
    %c0_4 = arith.constant 0 : index
    %3 = vector.load %arg2[%c0_2, %c0_3, %c0_4] : memref<8x8x128xf32, #tpu.memory_space<vmem>>, vector<8x8x128xf32>
    %4 = vector.shape_cast %3 : vector<8x8x128xf32> to vector<8x1x8x128xf32>
    %5 = vector.shape_cast %4 : vector<8x1x8x128xf32> to vector<8x1x8x128xf32>
    %6 = vector.broadcast %5 : vector<8x1x8x128xf32> to vector<8x2x8x128xf32>
    %7 = vector.shape_cast %6 : vector<8x2x8x128xf32> to vector<128x128xf32>
    %8 = arith.truncf %7 : vector<128x128xf32> to vector<128x128xbf16>
    %cst = arith.constant 0.000000e+00 : f32
    %9 = vector.broadcast %cst : f32 to vector<1x8x128xf32>
    %c0_5 = arith.constant 0 : index
    %c0_6 = arith.constant 0 : index
    %10 = vector.load %arg3[%c0_5, %c0_6] : memref<128x384xbf16, #tpu.memory_space<vmem>>, vector<128x384xbf16>
    %cst_7 = arith.constant dense<0.000000e+00> : vector<128x384xf32>
    %11 = tpu.matmul %2, %10, %cst_7 {dimension_numbers = #tpu.dot_dimension_numbers<[1], [0], [0], [1], [0, 0, 1, 1], [], []>} : vector<128x128xbf16>, vector<128x384xbf16>, vector<128x384xf32> -> vector<128x384xf32>
    %c0_8 = arith.constant 0 : index
    %c0_9 = arith.constant 0 : index
    %12 = vector.load %arg4[%c0_8, %c0_9] : memref<128x384xbf16, #tpu.memory_space<vmem>>, vector<128x384xbf16>
    %cst_10 = arith.constant dense<0.000000e+00> : vector<128x384xf32>
    %13 = tpu.matmul %8, %12, %cst_10 {dimension_numbers = #tpu.dot_dimension_numbers<[1], [0], [0], [1], [0, 0, 1, 1], [], []>} : vector<128x128xbf16>, vector<128x384xbf16>, vector<128x384xf32> -> vector<128x384xf32>
    %14 = arith.addf %11, %13 : vector<128x384xf32>
    %15 = vector.shape_cast %14 : vector<128x384xf32> to vector<16x8x384xf32>
    %16 = vector.extract_strided_slice %15 {offsets = [0, 0, 128], sizes = [16, 8, 128], strides = [1, 1, 1]} : vector<16x8x384xf32> to vector<16x8x128xf32>
    %17 = vector.extract_strided_slice %15 {offsets = [0, 0, 0], sizes = [15, 8, 128], strides = [1, 1, 1]} : vector<16x8x384xf32> to vector<15x8x128xf32>
    %18 = tpu.concatenate %9, %17 in 0 : vector<1x8x128xf32>, vector<15x8x128xf32> -> vector<16x8x128xf32>
    %19 = vector.extract_strided_slice %15 {offsets = [1, 0, 256], sizes = [15, 8, 128], strides = [1, 1, 1]} : vector<16x8x384xf32> to vector<15x8x128xf32>
    %20 = tpu.concatenate %19, %9 in 0 : vector<15x8x128xf32>, vector<1x8x128xf32> -> vector<16x8x128xf32>
    %21 = arith.addf %18, %16 : vector<16x8x128xf32>
    %22 = arith.addf %21, %20 : vector<16x8x128xf32>
    %c0_11 = arith.constant 0 : index
    %c0_12 = arith.constant 0 : index
    %23 = vector.load %arg5[%c0_11, %c0_12] : memref<1x128xf32, #tpu.memory_space<vmem>>, vector<1x128xf32>
    %24 = vector.shape_cast %23 : vector<1x128xf32> to vector<1x1x128xf32>
    %25 = vector.broadcast %24 : vector<1x1x128xf32> to vector<16x8x128xf32>
    %26 = arith.addf %22, %25 : vector<16x8x128xf32>
    %cst_13 = arith.constant 0.000000e+00 : f32
    %27 = vector.broadcast %cst_13 : f32 to vector<16x8x128xf32>
    %28 = arith.maximumf %26, %27 : vector<16x8x128xf32>
    %29 = vector.shape_cast %28 : vector<16x8x128xf32> to vector<128x128xf32>
    %30 = arith.truncf %29 : vector<128x128xf32> to vector<128x128xbf16>
    %c0_14 = arith.constant 0 : index
    %c0_15 = arith.constant 0 : index
    %31 = vector.load %arg6[%c0_14, %c0_15] : memref<128x384xbf16, #tpu.memory_space<vmem>>, vector<128x384xbf16>
    %cst_16 = arith.constant dense<0.000000e+00> : vector<128x384xf32>
    %32 = tpu.matmul %30, %31, %cst_16 {dimension_numbers = #tpu.dot_dimension_numbers<[1], [0], [0], [1], [0, 0, 1, 1], [], []>} : vector<128x128xbf16>, vector<128x384xbf16>, vector<128x384xf32> -> vector<128x384xf32>
    %33 = vector.shape_cast %32 : vector<128x384xf32> to vector<16x8x384xf32>
    %34 = vector.extract_strided_slice %33 {offsets = [0, 0, 128], sizes = [16, 8, 128], strides = [1, 1, 1]} : vector<16x8x384xf32> to vector<16x8x128xf32>
    %35 = vector.extract_strided_slice %33 {offsets = [0, 0, 0], sizes = [15, 8, 128], strides = [1, 1, 1]} : vector<16x8x384xf32> to vector<15x8x128xf32>
    %36 = tpu.concatenate %9, %35 in 0 : vector<1x8x128xf32>, vector<15x8x128xf32> -> vector<16x8x128xf32>
    %37 = vector.extract_strided_slice %33 {offsets = [1, 0, 256], sizes = [15, 8, 128], strides = [1, 1, 1]} : vector<16x8x384xf32> to vector<15x8x128xf32>
    %38 = tpu.concatenate %37, %9 in 0 : vector<15x8x128xf32>, vector<1x8x128xf32> -> vector<16x8x128xf32>
    %39 = arith.addf %36, %34 : vector<16x8x128xf32>
    %40 = arith.addf %39, %38 : vector<16x8x128xf32>
    %c0_17 = arith.constant 0 : index
    %c0_18 = arith.constant 0 : index
    %41 = vector.load %arg7[%c0_17, %c0_18] : memref<1x128xf32, #tpu.memory_space<vmem>>, vector<1x128xf32>
    %42 = vector.shape_cast %41 : vector<1x128xf32> to vector<1x1x128xf32>
    %43 = vector.broadcast %42 : vector<1x1x128xf32> to vector<16x8x128xf32>
    %44 = arith.addf %40, %43 : vector<16x8x128xf32>
    %c0_19 = arith.constant 0 : index
    %c0_20 = arith.constant 0 : index
    %45 = vector.load %arg8[%c0_19, %c0_20] : memref<128x128xbf16, #tpu.memory_space<vmem>>, vector<128x128xbf16>
    %cst_21 = arith.constant dense<0.000000e+00> : vector<128x128xf32>
    %46 = tpu.matmul %2, %45, %cst_21 {dimension_numbers = #tpu.dot_dimension_numbers<[1], [0], [0], [1], [0, 0, 1, 1], [], []>} : vector<128x128xbf16>, vector<128x128xbf16>, vector<128x128xf32> -> vector<128x128xf32>
    %c0_22 = arith.constant 0 : index
    %c0_23 = arith.constant 0 : index
    %47 = vector.load %arg9[%c0_22, %c0_23] : memref<128x128xbf16, #tpu.memory_space<vmem>>, vector<128x128xbf16>
    %cst_24 = arith.constant dense<0.000000e+00> : vector<128x128xf32>
    %48 = tpu.matmul %8, %47, %cst_24 {dimension_numbers = #tpu.dot_dimension_numbers<[1], [0], [0], [1], [0, 0, 1, 1], [], []>} : vector<128x128xbf16>, vector<128x128xbf16>, vector<128x128xf32> -> vector<128x128xf32>
    %49 = arith.addf %46, %48 : vector<128x128xf32>
    %50 = vector.shape_cast %49 : vector<128x128xf32> to vector<16x8x128xf32>
    %c0_25 = arith.constant 0 : index
    %c0_26 = arith.constant 0 : index
    %51 = vector.load %arg10[%c0_25, %c0_26] : memref<1x128xf32, #tpu.memory_space<vmem>>, vector<1x128xf32>
    %52 = vector.shape_cast %51 : vector<1x128xf32> to vector<1x1x128xf32>
    %53 = vector.broadcast %52 : vector<1x1x128xf32> to vector<16x8x128xf32>
    %54 = arith.addf %50, %53 : vector<16x8x128xf32>
    %55 = arith.addf %44, %54 : vector<16x8x128xf32>
    %cst_27 = arith.constant 0.000000e+00 : f32
    %56 = vector.broadcast %cst_27 : f32 to vector<16x8x128xf32>
    %57 = arith.maximumf %55, %56 : vector<16x8x128xf32>
    %c0_28 = arith.constant 0 : index
    %c0_29 = arith.constant 0 : index
    %c0_30 = arith.constant 0 : index
    %58 = vector.load %arg11[%c0_28, %c0_29, %c0_30] : memref<16x8x128xf32, #tpu.memory_space<vmem>>, vector<16x8x128xf32>
    tpu.vector_store %arg11[%c0_28, %c0_29, %c0_30], %57 {strides = array<i32>} : memref<16x8x128xf32, #tpu.memory_space<vmem>>, vector<16x8x128xf32>,
    return
  }
  func.func @transform_0(%arg0: i32) -> (i32, i32, i32) {
    %c0_i32 = arith.constant 0 : i32
    %c0_i32_0 = arith.constant 0 : i32
    %c0_i32_1 = arith.constant 0 : i32
    return %c0_i32, %arg0, %c0_i32_0 : i32, i32, i32
  }
  func.func @transform_1(%arg0: i32) -> (i32, i32, i32) {
    %c0_i32 = arith.constant 0 : i32
    %c0_i32_0 = arith.constant 0 : i32
    %c0_i32_1 = arith.constant 0 : i32
    return %c0_i32, %arg0, %c0_i32_0 : i32, i32, i32
  }
  func.func @transform_2(%arg0: i32) -> (i32, i32) {
    %c0_i32 = arith.constant 0 : i32
    %c0_i32_0 = arith.constant 0 : i32
    %c0_i32_1 = arith.constant 0 : i32
    return %c0_i32, %c0_i32_0 : i32, i32
  }
  func.func @transform_3(%arg0: i32) -> (i32, i32) {
    %c0_i32 = arith.constant 0 : i32
    %c0_i32_0 = arith.constant 0 : i32
    %c0_i32_1 = arith.constant 0 : i32
    return %c0_i32, %c0_i32_0 : i32, i32
  }
  func.func @transform_4(%arg0: i32) -> (i32, i32) {
    %c0_i32 = arith.constant 0 : i32
    %c0_i32_0 = arith.constant 0 : i32
    %c0_i32_1 = arith.constant 0 : i32
    return %c0_i32, %c0_i32_0 : i32, i32
  }
  func.func @transform_5(%arg0: i32) -> (i32, i32) {
    %c0_i32 = arith.constant 0 : i32
    %c0_i32_0 = arith.constant 0 : i32
    %c0_i32_1 = arith.constant 0 : i32
    return %c0_i32, %c0_i32_0 : i32, i32
  }
  func.func @transform_6(%arg0: i32) -> (i32, i32) {
    %c0_i32 = arith.constant 0 : i32
    %c0_i32_0 = arith.constant 0 : i32
    %c0_i32_1 = arith.constant 0 : i32
    return %c0_i32, %c0_i32_0 : i32, i32
  }
  func.func @transform_7(%arg0: i32) -> (i32, i32) {
    %c0_i32 = arith.constant 0 : i32
    %c0_i32_0 = arith.constant 0 : i32
    %c0_i32_1 = arith.constant 0 : i32
    return %c0_i32, %c0_i32_0 : i32, i32
  }
  func.func @transform_8(%arg0: i32) -> (i32, i32) {
    %c0_i32 = arith.constant 0 : i32
    %c0_i32_0 = arith.constant 0 : i32
    %c0_i32_1 = arith.constant 0 : i32
    return %c0_i32, %c0_i32_0 : i32, i32
  }
  func.func @transform_9(%arg0: i32) -> (i32, i32) {
    %c0_i32 = arith.constant 0 : i32
    %c0_i32_0 = arith.constant 0 : i32
    %c0_i32_1 = arith.constant 0 : i32
    return %c0_i32, %c0_i32_0 : i32, i32
  }
  func.func @transform_10(%arg0: i32) -> (i32, i32, i32) {
    %c0_i32 = arith.constant 0 : i32
    %c0_i32_0 = arith.constant 0 : i32
    %c0_i32_1 = arith.constant 0 : i32
    return %c0_i32, %arg0, %c0_i32_0 : i32, i32, i32
  }
}

</mosaic_0001>

<bundles_post_ra>
// kernel: _forward_impl.1
= control target key start
LH: loop header
LB: loop body
LE: loop exit
PB: predicated region body
PF: predicated region fallthrough
CT: control target
= control target key end

     0   :  { %v2231_v1 = vmov 0   ;;  %s2961_s3 = inlined_call_operand.vmem [shape: bf16[128,384], index: 3, kind: input, shape index: {}]   ;;  %s2962_s1 = inlined_call_operand.vmem [shape: f32[8,8,128], index: 1, kind: input, shape index: {}]   ;;  %s2963_s2 = inlined_call_operand.vmem [shape: bf16[128,384], index: 2, kind: input, shape index: {}]   ;;  %s2964_s0 = inlined_call_operand.vmem [shape: f32[16,8,128], index: 0, kind: input, shape index: {}]   ;;  %s2965_s5 = inlined_call_operand.vmem [shape: bf16[128,384], index: 5, kind: input, shape index: {}]   ;;  %s2966_s8 = inlined_call_operand.vmem [shape: bf16[128,128], index: 8, kind: input, shape index: {}]   ;;  %s2967_s7 = inlined_call_operand.vmem [shape: bf16[128,128], index: 7, kind: input, shape index: {}]   ;;  %s2968_s4 = inlined_call_operand.vmem [shape: f32[1,128], index: 4, kind: input, shape index: {}]   ;;  %s2969_s9 = inlined_call_operand.vmem [shape: f32[1,128], index: 9, kind: input, shape index: {}]   ;;  %s2970_s6 = inlined_call_operand.vmem [shape: f32[1,128], index: 6, kind: input, shape index: {}]   ;;  %s2971_s10 = inlined_call_operand.vmem [shape: f32[16,8,128], index: 10, kind: output, shape index: {}]  }
   0x1   :  { %v2119_v0 = vld [vmem:[%s2961_s3 + $0x4] ss:$12 sps:$4 sm:$0xff]   ;;  %300 = vmatprep.mubr.bf16.mxu0 %v2231_v1  ;;  %v2121_v2 = vld [vmem:[%s2961_s3 + $0x8] ss:$12 sps:$4 sm:$0xff]   ;;  %v2122_v3 = vld [vmem:[%s2961_s3] ss:$12 sps:$4 sm:$0xff]  }
   0x2   :  { %268 = vmatprep.subr.bf16.mxu0 %v2119_v0  ;;  %1882 = vmatprep.subr.bf16.mxu1 %v2121_v2  ;;  %v2123_v4 = vld [vmem:[%s2961_s3 + $0x1c] ss:$12 sps:$4 sm:$0xff]   ;;  %v2125_v5 = vld [vmem:[%s2961_s3 + $0x20] ss:$12 sps:$4 sm:$0xff]   ;;  %v2126_v6 = vld [vmem:[%s2961_s3 + $0x18] ss:$12 sps:$4 sm:$0xff]  }
   0x3   :  { %269 = vmatpush1.bf16.msra.mxu0 %v2122_v3  ;;  %1883 = vmatpush3.bf16.msra.mxu1 %v2121_v2  ;;  %v2127_v7 = vld [vmem:[%s2961_s3 + $0x34] ss:$12 sps:$4 sm:$0xff]   ;;  %v2129_v8 = vld [vmem:[%s2961_s3 + $0x38] ss:$12 sps:$4 sm:$0xff]   ;;  %v2130_v9 = vld [vmem:[%s2961_s3 + $0x30] ss:$12 sps:$4 sm:$0xff]  }
   0x4   :  { %270 = vmatprep.subr.bf16.mxu0 %v2123_v4  ;;  %1884 = vmatprep.subr.bf16.mxu1 %v2125_v5  ;;  %v2131_v10 = vld [vmem:[%s2961_s3 + $0x4c] ss:$12 sps:$4 sm:$0xff]   ;;  %v2133_v11 = vld [vmem:[%s2961_s3 + $0x50] ss:$12 sps:$4 sm:$0xff]   ;;  %v2134_v12 = vld [vmem:[%s2961_s3 + $0x48] ss:$12 sps:$4 sm:$0xff]  }
   0x5   :  { %v2135_v13 = vld [vmem:[%s2961_s3 + $0x64] ss:$12 sps:$4 sm:$0xff]   ;;  %v2137_v14 = vld [vmem:[%s2961_s3 + $0x68] ss:$12 sps:$4 sm:$0xff]   ;;  %v2138_v15 = vld [vmem:[%s2961_s3 + $0x60] ss:$12 sps:$4 sm:$0xff]  }
   0x6   :  { %v2139_v16 = vld [vmem:[%s2961_s3 + $0x7c] ss:$12 sps:$4 sm:$0xff]   ;;  %v2141_v17 = vld [vmem:[%s2961_s3 + $0x80] ss:$12 sps:$4 sm:$0xff]   ;;  %v2142_v20 = vld [vmem:[%s2961_s3 + $0x78] ss:$12 sps:$4 sm:$0xff]  }
   0x7   :  { %271 = vmatpush1.bf16.msra.mxu0 %v2126_v6  ;;  %1885 = vmatpush3.bf16.msra.mxu1 %v2125_v5  ;;  %v60_v18 = vld [vmem:[%s2962_s1] sm:$0xff]  ;;  %v2146_v23 = vld [vmem:[%s2961_s3 + $0x90] ss:$12 sps:$4 sm:$0xff]   ;;  %v2147_v24 = vld [vmem:[%s2961_s3 + $0xac] ss:$12 sps:$4 sm:$0xff]  }
   0x8   :  { %272 = vmatprep.subr.bf16.mxu0 %v2127_v7  ;;  %1886 = vmatprep.subr.bf16.mxu1 %v2129_v8  ;;  %v2342_v19 = vpack.c.bf16 %v60_v18, %v60_v18  ;;  %v2143_v21 = vld [vmem:[%s2961_s3 + $0x94] ss:$12 sps:$4 sm:$0xff]   ;;  %v2145_v22 = vld [vmem:[%s2961_s3 + $0x98] ss:$12 sps:$4 sm:$0xff]   ;;  %v2149_v25 = vld [vmem:[%s2961_s3 + $0xb0] ss:$12 sps:$4 sm:$0xff]  }
   0x9   :  { %v2150_v26 = vld [vmem:[%s2961_s3 + $0xa8] ss:$12 sps:$4 sm:$0xff]   ;;  %v2153_v28 = vld [vmem:[%s2963_s2 + $0x4] ss:$12 sps:$4 sm:$0xff]   ;;  %v2151_v32 = vld [vmem:[%s2963_s2] ss:$12 sps:$4 sm:$0xff]  }
   0xa   :  { %1898 = vmatprep.mubr.bf16.mxu1 %v2342_v19  ;;  %v61_v27 = vld [vmem:[%s2962_s1 + $0x8] sm:$0xff]  ;;  %v62_v31 = vld [vmem:[%s2962_s1 + $0x10] sm:$0xff]  ;;  %v63_v36 = vld [vmem:[%s2962_s1 + $0x18] sm:$0xff] }
   0xb   :  { %273 = vmatpush1.bf16.msra.mxu0 %v2130_v9  ;;  %1887 = vmatpush3.bf16.msra.mxu1 %v2129_v8  ;;  %v2154_v29 = vld [vmem:[%s2963_s2 + $0x8] ss:$12 sps:$4 sm:$0xff]   ;;  %v2375_v30 = vpack.c.bf16 %v61_v27, %v61_v27  ;;  %v2155_v33 = vld [vmem:[%s2963_s2 + $0x20] ss:$12 sps:$4 sm:$0xff]   ;;  %v2386_v34 = vpack.c.bf16 %v62_v31, %v62_v31  ;;  %v2156_v37 = vld [vmem:[%s2963_s2 + $0x18] ss:$12 sps:$4 sm:$0xff]   ;;  %v2410_v41 = vpack.c.bf16 %v63_v36, %v63_v36 }
   0xc   :  { %274 = vmatprep.subr.bf16.mxu0 %v2131_v10  ;;  %1888 = vmatprep.subr.bf16.mxu1 %v2133_v11  ;;  %v2158_v35 = vld [vmem:[%s2963_s2 + $0x1c] ss:$12 sps:$4 sm:$0xff]   ;;  %v2159_v38 = vld [vmem:[%s2963_s2 + $0x38] ss:$12 sps:$4 sm:$0xff]   ;;  %v2163_v39 = vld [vmem:[%s2963_s2 + $0x34] ss:$12 sps:$4 sm:$0xff]  }
   0xd   :  { %v64_v40 = vld [vmem:[%s2962_s1 + $0x20] sm:$0xff]  ;;  %v2160_v42 = vld [vmem:[%s2963_s2 + $0x50] ss:$12 sps:$4 sm:$0xff]   ;;  %v2168_v45 = vld [vmem:[%s2963_s2 + $0x4c] ss:$12 sps:$4 sm:$0xff]  }
   0xe   :  { %v2415_v43 = vpack.c.bf16 %v64_v40, %v64_v40  ;;  %v2161_v44 = vld [vmem:[%s2963_s2 + $0x30] ss:$12 sps:$4 sm:$0xff]   ;;  %v65_v46 = vld [vmem:[%s2962_s1 + $0x28] sm:$0xff]  ;;  %v2169_v57 = vld [vmem:[%s2963_s2 + $0x98] ss:$12 sps:$4 sm:$0xff]  }
   0xf   :  { %275 = vmatpush1.bf16.msra.mxu0 %v2134_v12  ;;  %1889 = vmatpush3.bf16.msra.mxu1 %v2133_v11  ;;  %v2164_v47 = vld [vmem:[%s2963_s2 + $0x68] ss:$12 sps:$4 sm:$0xff]   ;;  %v2439_v50 = vpack.c.bf16 %v65_v46, %v65_v46  ;;  %v2165_v51 = vld [vmem:[%s2963_s2 + $0x80] ss:$12 sps:$4 sm:$0xff]   ;;  %v2173_v53 = vld [vmem:[%s2963_s2 + $0x64] ss:$12 sps:$4 sm:$0xff]  }
  0x10   :  { %276 = vmatprep.subr.bf16.mxu0 %v2135_v13  ;;  %1890 = vmatprep.subr.bf16.mxu1 %v2137_v14  ;;  %v66_v48 = vld [vmem:[%s2962_s1 + $0x30] sm:$0xff]  ;;  %v2171_v54 = vld [vmem:[%s2963_s2 + $0x60] ss:$12 sps:$4 sm:$0xff]   ;;  %v67_v55 = vld [vmem:[%s2962_s1 + $0x38] sm:$0xff] }
  0x11   :  { %v2166_v49 = vld [vmem:[%s2963_s2 + $0x48] ss:$12 sps:$4 sm:$0xff]   ;;  %v2444_v52 = vpack.c.bf16 %v66_v48, %v66_v48  ;;  %v36_v58 = vld [vmem:[%s2964_s0] sm:$0xff]  ;;  %v2471_v60 = vpack.c.bf16 %v67_v55, %v67_v55  ;;  %v2170_v61 = vld [vmem:[%s2963_s2 + $0xb0] ss:$12 sps:$4 sm:$0xff]  }
  0x12   :  { %v2176_v56 = vld [vmem:[%s2963_s2 + $0x7c] ss:$12 sps:$4 sm:$0xff]   ;;  %v2174_v63 = vld [vmem:[%s2963_s2 + $0x78] ss:$12 sps:$4 sm:$0xff]   ;;  %v2179_v0 = vld [vmem:[%s2963_s2 + $0x94] ss:$12 sps:$4 sm:$0xff]  }
  0x13   :  { %277 = vmatpush1.bf16.msra.mxu0 %v2138_v15  ;;  %1891 = vmatpush3.bf16.msra.mxu1 %v2137_v14  ;;  %v37_v59 = vld [vmem:[%s2964_s0 + $0x8] sm:$0xff]  ;;  %v38_v2 = vld [vmem:[%s2964_s0 + $0x10] sm:$0xff]  ;;  %v39_v3 = vld [vmem:[%s2964_s0 + $0x18] sm:$0xff] }
  0x14   :  { %278 = vmatprep.subr.bf16.mxu0 %v2139_v16  ;;  %1892 = vmatprep.subr.bf16.mxu1 %v2141_v17  ;;  %v2476_v62 = vpack.c.bf16 %v37_v59, %v36_v58  ;;  %v40_v4 = vld [vmem:[%s2964_s0 + $0x20] sm:$0xff]  ;;  %v41_v5 = vld [vmem:[%s2964_s0 + $0x28] sm:$0xff]  ;;  %v2177_v6 = vld [vmem:[%s2963_s2 + $0x90] ss:$12 sps:$4 sm:$0xff]   ;;  %v2503_v7 = vpack.c.bf16 %v39_v3, %v38_v2 }
  0x15   :  { %v2505_v8 = vpack.c.bf16 %v41_v5, %v40_v4  ;;  %v2182_v9 = vld [vmem:[%s2963_s2 + $0xac] ss:$12 sps:$4 sm:$0xff]   ;;  %v2180_v10 = vld [vmem:[%s2963_s2 + $0xa8] ss:$12 sps:$4 sm:$0xff]   ;;  %v44_v13 = vld [vmem:[%s2964_s0 + $0x40] sm:$0xff] }
  0x16   :  { %v42_v11 = vld [vmem:[%s2964_s0 + $0x30] sm:$0xff]  ;;  %v43_v12 = vld [vmem:[%s2964_s0 + $0x38] sm:$0xff]  ;;  %v45_v14 = vld [vmem:[%s2964_s0 + $0x48] sm:$0xff] }
  0x17   :  { %279 = vmatpush1.bf16.msra.mxu0 %v2142_v20  ;;  %1893 = vmatpush3.bf16.msra.mxu1 %v2141_v17  ;;  %v2529_v15 = vpack.c.bf16 %v43_v12, %v42_v11  ;;  %v2531_v16 = vpack.c.bf16 %v45_v14, %v44_v13  ;;  %v46_v17 = vld [vmem:[%s2964_s0 + $0x50] sm:$0xff]  ;;  %v47_v18 = vld [vmem:[%s2964_s0 + $0x58] sm:$0xff]  ;;  %v48_v20 = vld [vmem:[%s2964_s0 + $0x60] sm:$0xff] }
  0x18   :  { %280 = vmatprep.subr.bf16.mxu0 %v2143_v21  ;;  %1894 = vmatprep.subr.bf16.mxu1 %v2145_v22  ;;  %v49_v21 = vld [vmem:[%s2964_s0 + $0x68] sm:$0xff]  ;;  %v2186_v31 = vld [vmem:[%s2965_s5 + $0x18] ss:$12 sps:$4 sm:$0xff]  }
  0x19   :  { %v2183_v27 = vld [vmem:[%s2965_s5] ss:$12 sps:$4 sm:$0xff]   ;;  %v2200_v40 = vld [vmem:[%s2965_s5 + $0x38] ss:$12 sps:$4 sm:$0xff]   ;;  %v2208_v48 = vld [vmem:[%s2965_s5 + $0x68] ss:$12 sps:$4 sm:$0xff]  }
  0x1a   :  { %v2195_v36 = vld [vmem:[%s2965_s5 + $0x4c] ss:$12 sps:$4 sm:$0xff]   ;;  %v2662_v58 = vld [vmem:[%s2967_s7] sm:$0xff]  }
  0x1b   :  { %281 = vmatpush1.bf16.msra.mxu0 %v2146_v23  ;;  %1895 = vmatpush3.bf16.msra.mxu1 %v2145_v22  ;;  %v2549_v22 = vpack.c.bf16 %v47_v18, %v46_v17  ;;  %v2551_v23 = vpack.c.bf16 %v49_v21, %v48_v20  ;;  %v2201_v46 = vld [vmem:[%s2965_s5 + $0x78] ss:$12 sps:$4 sm:$0xff]  }
  0x1c   :  { %282 = vmatprep.subr.bf16.mxu0 %v2147_v24  ;;  %1896 = vmatprep.subr.bf16.mxu1 %v2149_v25  ;;  %v50_v24 = vld [vmem:[%s2964_s0 + $0x70] sm:$0xff]  ;;  %v2213_v55 = vld [vmem:[%s2965_s5 + $0x98] ss:$12 sps:$4 sm:$0xff]  }
  0x1f   :  { %283 = vmatpush1.bf16.msra.mxu0 %v2150_v26  ;;  %1897 = vmatpush3.bf16.msra.mxu1 %v2149_v25  ;;  %v51_v25 = vld [vmem:[%s2964_s0 + $0x78] sm:$0xff] }
  0x20   :  { %604 = vmatprep.subr.bf16.mxu0 %v2153_v28  ;;  %1914 = vmatprep.subr.bf16.mxu1 %v2154_v29  ;;  %v2563_v26 = vpack.c.bf16 %v51_v25, %v50_v24  ;;  %v2185_v28 = vld [vmem:[%s2965_s5 + $0x4] ss:$12 sps:$4 sm:$0xff]  }
  0x22   :  { %301 = vmatmul.mubr.bf16.vlgmr.msra.gmra.mrb[0].mxu0 %v2342_v19  ;;  %1899 = vmatmul.mubr.bf16.vlgmr.msra.gmra.mrb[0].mxu1 %v2375_v30 }
  0x23   :  { %605 = vmatpush1.bf16.msra.mxu0 %v2151_v32  ;;  %1915 = vmatpush3.bf16.msra.mxu1 %v2154_v29  ;;  %v2188_v29 = vld [vmem:[%s2965_s5 + $0x1c] ss:$12 sps:$4 sm:$0xff]  }
  0x24   :  { %1916 = vmatprep.subr.bf16.mxu1 %v2155_v33  ;;  %310 = vmatprep.mubr.bf16.mxu0 %v2231_v1  ;;  %v2189_v32 = vld [vmem:[%s2965_s5 + $0x30] ss:$12 sps:$4 sm:$0xff]  }
  0x25   :  { %1902 = vmatprep.mubr.bf16.mxu1 %v2386_v34  ;;  %606 = vmatprep.subr.bf16.mxu0 %v2158_v35  ;;  %v2192_v35 = vld [vmem:[%s2965_s5 + $0x8] ss:$12 sps:$4 sm:$0xff]  }
  0x27   :  { %1917 = vmatpush3.bf16.msra.mxu1 %v2155_v33  ;;  %607 = vmatpush1.bf16.msra.mxu0 %v2156_v37  ;;  %v2191_v33 = vld [vmem:[%s2965_s5 + $0x34] ss:$12 sps:$4 sm:$0xff]  }
  0x28   :  { %1918 = vmatprep.subr.bf16.mxu1 %v2159_v38  ;;  %608 = vmatprep.subr.bf16.mxu0 %v2163_v39  ;;  %v2196_v37 = vld [vmem:[%s2965_s5 + $0x20] ss:$12 sps:$4 sm:$0xff]   ;;  %v2199_v39 = vld [vmem:[%s2965_s5 + $0x64] ss:$12 sps:$4 sm:$0xff]  }
  0x2a   :  { %311 = vmatmul.mubr.bf16.gmra.mrb[4].mxu0 %v2375_v30  ;;  %1903 = vmatmul.mubr.bf16.gmra.mrb[4].mxu1 %v2410_v41 }
  0x2b   :  { %1919 = vmatpush3.bf16.msra.mxu1 %v2159_v38  ;;  %320 = vmatprep.mubr.bf16.mxu0 %v2231_v1  ;;  %v2193_v38 = vld [vmem:[%s2965_s5 + $0x48] ss:$12 sps:$4 sm:$0xff]  }
  0x2c   :  { %1920 = vmatprep.subr.bf16.mxu1 %v2160_v42  ;;  %1906 = vmatprep.mubr.bf16.mxu1 %v2415_v43 }
  0x2d   :  { %609 = vmatpush1.bf16.msra.mxu0 %v2161_v44  ;;  %v2203_v44 = vld [vmem:[%s2965_s5 + $0x7c] ss:$12 sps:$4 sm:$0xff]  }
  0x2e   :  { %610 = vmatprep.subr.bf16.mxu0 %v2168_v45  ;;  %v2204_v45 = vld [vmem:[%s2965_s5 + $0x50] ss:$12 sps:$4 sm:$0xff]  }
  0x2f   :  { %1921 = vmatpush3.bf16.msra.mxu1 %v2160_v42  ;;  %v2197_v42 = vld [vmem:[%s2965_s5 + $0x60] ss:$12 sps:$4 sm:$0xff]  }
  0x30   :  { %1922 = vmatprep.subr.bf16.mxu1 %v2164_v47 }
  0x31   :  { %611 = vmatpush1.bf16.msra.mxu0 %v2166_v49  ;;  %v2205_v49 = vld [vmem:[%s2965_s5 + $0x90] ss:$12 sps:$4 sm:$0xff]  }
  0x32   :  { %321 = vmatmul.mubr.bf16.gmra.mrb[8].mxu0 %v2386_v34  ;;  %1907 = vmatmul.mubr.bf16.gmra.mrb[8].mxu1 %v2439_v50 }
  0x33   :  { %1923 = vmatpush3.bf16.msra.mxu1 %v2164_v47  ;;  %330 = vmatprep.mubr.bf16.mxu0 %v2231_v1  ;;  %v2207_v47 = vld [vmem:[%s2965_s5 + $0x94] ss:$12 sps:$4 sm:$0xff]  }
  0x34   :  { %1924 = vmatprep.subr.bf16.mxu1 %v2165_v51  ;;  %1910 = vmatprep.mubr.bf16.mxu1 %v2444_v52 }
  0x35   :  { %612 = vmatprep.subr.bf16.mxu0 %v2173_v53  ;;  %v2212_v53 = vld [vmem:[%s2965_s5 + $0x80] ss:$12 sps:$4 sm:$0xff]  }
  0x36   :  { %613 = vmatpush1.bf16.msra.mxu0 %v2171_v54  ;;  %v2209_v54 = vld [vmem:[%s2965_s5 + $0xa8] ss:$12 sps:$4 sm:$0xff]  }
  0x37   :  { %1925 = vmatpush3.bf16.msra.mxu1 %v2165_v51  ;;  %614 = vmatprep.subr.bf16.mxu0 %v2176_v56  ;;  %v2211_v51 = vld [vmem:[%s2965_s5 + $0xac] ss:$12 sps:$4 sm:$0xff]   ;;  %v2215_v56 = vld [vmem:[%s2965_s5 + $0xb0] ss:$12 sps:$4 sm:$0xff]  }
  0x38   :  { %1926 = vmatprep.subr.bf16.mxu1 %v2169_v57 }
  0x3a   :  { %331 = vmatmul.mubr.bf16.gmra.mrb[12].mxu0 %v2410_v41  ;;  %1911 = vmatmul.mubr.bf16.gmra.mrb[12].mxu1 %v2471_v60 }
  0x3b   :  { %1927 = vmatpush3.bf16.msra.mxu1 %v2169_v57  ;;  %340 = vmatprep.mubr.bf16.mxu0 %v2231_v1  ;;  %v2214_v57 = vld [vmem:[%s2966_s8] sm:$0xff]  }
  0x3c   :  { %1928 = vmatprep.subr.bf16.mxu1 %v2170_v61  ;;  %1930 = vmatprep.mubr.bf16.mxu1 %v2476_v62 }
  0x3d   :  { %615 = vmatpush1.bf16.msra.mxu0 %v2174_v63 }
  0x3e   :  { %616 = vmatprep.subr.bf16.mxu0 %v2179_v0 }
  0x3f   :  { %1929 = vmatpush3.bf16.msra.mxu1 %v2170_v61 }
  0x40   :  { %1051 = vmatprep.subr.bf16.mxu1 %v2185_v28 }
  0x41   :  { %617 = vmatpush1.bf16.msra.mxu0 %v2177_v6 }
  0x42   :  { %341 = vmatmul.mubr.bf16.gmra.mrb[16].mxu0 %v2415_v43  ;;  %1931 = vmatmul.mubr.bf16.vlgmr.msra.gmra.mrb[16].mxu1 %v2503_v7 }
  0x43   :  { %350 = vmatprep.mubr.bf16.mxu0 %v2231_v1  ;;  %1934 = vmatprep.mubr.bf16.mxu1 %v2505_v8 }
  0x44   :  { %618 = vmatprep.subr.bf16.mxu0 %v2182_v9  ;;  %1052 = vmatpush1.bf16.msra.mxu1 %v2183_v27 }
  0x45   :  { %619 = vmatpush1.bf16.msra.mxu0 %v2180_v10  ;;  %1053 = vmatprep.subr.bf16.mxu1 %v2188_v29 }
  0x46   :  { %1946 = vmatprep.subr.bf16.mxu0 %v2192_v35 }
  0x48   :  { %1054 = vmatpush1.bf16.msra.mxu1 %v2186_v31 }
  0x49   :  { %1055 = vmatprep.subr.bf16.mxu1 %v2191_v33 }
  0x4a   :  { %351 = vmatmul.mubr.bf16.gmra.mrb[20].mxu0 %v2439_v50  ;;  %1935 = vmatmul.mubr.bf16.gmra.mrb[4].mxu1 %v2529_v15 }
  0x4b   :  { %360 = vmatprep.mubr.bf16.mxu0 %v2231_v1  ;;  %1938 = vmatprep.mubr.bf16.mxu1 %v2531_v16 }
  0x4c   :  { %1056 = vmatpush1.bf16.msra.mxu1 %v2189_v32 }
  0x4d   :  { %1057 = vmatprep.subr.bf16.mxu1 %v2195_v36 }
  0x50   :  { %1058 = vmatpush1.bf16.msra.mxu1 %v2193_v38 }
  0x51   :  { %1059 = vmatprep.subr.bf16.mxu1 %v2199_v39 }
  0x52   :  { %361 = vmatmul.mubr.bf16.gmra.mrb[24].mxu0 %v2444_v52  ;;  %1939 = vmatmul.mubr.bf16.gmra.mrb[8].mxu1 %v2549_v22 }
  0x53   :  { %370 = vmatprep.mubr.bf16.mxu0 %v2231_v1  ;;  %1942 = vmatprep.mubr.bf16.mxu1 %v2551_v23 }
  0x54   :  { %1060 = vmatpush1.bf16.msra.mxu1 %v2197_v42 }
  0x55   :  { %1061 = vmatprep.subr.bf16.mxu1 %v2203_v44 }
  0x58   :  { %1062 = vmatpush1.bf16.msra.mxu1 %v2201_v46 }
  0x59   :  { %1063 = vmatprep.subr.bf16.mxu1 %v2207_v47 }
  0x5a   :  { %371 = vmatmul.mubr.bf16.gmra.mrb[28].mxu0 %v2471_v60  ;;  %1943 = vmatmul.mubr.bf16.gmra.mrb[12].mxu1 %v2563_v26 }
  0x5b   :  { %636 = vmatprep.mubr.bf16.mxu0 %v2231_v1  ;;  %1083 = vmatprep.mubr.bf16.mxu1 %v2231_v1 }
  0x5c   :  { %1064 = vmatpush1.bf16.msra.mxu1 %v2205_v49 }
  0x5d   :  { %1065 = vmatprep.subr.bf16.mxu1 %v2211_v51 }
  0x60   :  { %1066 = vmatpush1.bf16.msra.mxu1 %v2209_v54 }
  0x61   :  { %1978 = vmatprep.subr.bf16.mxu1 %v2214_v57 }
  0x62   :  { %637 = vmatmul.mubr.bf16.vlgmr.msra.gmra.mrb[0].mxu0 %v2476_v62 }
  0x63   :  { %646 = vmatprep.mubr.bf16.mxu0 %v2231_v1  ;;  %1947 = vmatpush3.bf16.msra.mxu0 %v2192_v35  ;;  %v2686_v35 = vld [vmem:[%s2968_s4] ss:$0 sm:$0xff] }
  0x64   :  { %1948 = vmatprep.subr.bf16.mxu0 %v2196_v37 }
  0x67   :  { %1949 = vmatpush3.bf16.msra.mxu0 %v2196_v37 }
  0x68   :  { %1950 = vmatprep.subr.bf16.mxu0 %v2200_v40 }
  0x6a   :  { %647 = vmatmul.mubr.bf16.gmra.mrb[4].mxu0 %v2503_v7 }
  0x6b   :  { %656 = vmatprep.mubr.bf16.mxu0 %v2231_v1  ;;  %1951 = vmatpush3.bf16.msra.mxu0 %v2200_v40 }
  0x6c   :  { %1952 = vmatprep.subr.bf16.mxu0 %v2204_v45 }
  0x6f   :  { %1953 = vmatpush3.bf16.msra.mxu0 %v2204_v45 }
  0x70   :  { %1954 = vmatprep.subr.bf16.mxu0 %v2208_v48 }
  0x72   :  { %657 = vmatmul.mubr.bf16.gmra.mrb[8].mxu0 %v2505_v8 }
  0x73   :  { %666 = vmatprep.mubr.bf16.mxu0 %v2231_v1  ;;  %1955 = vmatpush3.bf16.msra.mxu0 %v2208_v48 }
  0x74   :  { %1956 = vmatprep.subr.bf16.mxu0 %v2212_v53 }
  0x77   :  { %1957 = vmatpush3.bf16.msra.mxu0 %v2212_v53 }
  0x78   :  { %1958 = vmatprep.subr.bf16.mxu0 %v2213_v55 }
  0x7a   :  { %667 = vmatmul.mubr.bf16.gmra.mrb[12].mxu0 %v2529_v15 }
  0x7b   :  { %676 = vmatprep.mubr.bf16.mxu0 %v2231_v1  ;;  %1959 = vmatpush3.bf16.msra.mxu0 %v2213_v55  ;;  %v2216_v55 = vld [vmem:[%s2966_s8 + $0x8] sm:$0xff]  }
  0x7c   :  { %1960 = vmatprep.subr.bf16.mxu0 %v2215_v56 }
  0x7f   :  { %1961 = vmatpush3.bf16.msra.mxu0 %v2215_v56 }
  0x80   :  { %2010 = vmatprep.subr.bf16.mxu0 %v2662_v58 }
  0x82   :  { %677 = vmatmul.mubr.bf16.gmra.mrb[16].mxu0 %v2531_v16 }
  0x83   :  { %686 = vmatprep.mubr.bf16.mxu0 %v2231_v1 }
  0x8a   :  { %687 = vmatmul.mubr.bf16.gmra.mrb[20].mxu0 %v2549_v22 }
  0x8b   :  { %696 = vmatprep.mubr.bf16.mxu0 %v2231_v1 }
  0x92   :  { %697 = vmatmul.mubr.bf16.gmra.mrb[24].mxu0 %v2551_v23 }
  0x93   :  { %706 = vmatprep.mubr.bf16.mxu0 %v2231_v1 }
  0x9a   :  { %707 = vmatmul.mubr.bf16.gmra.mrb[28].mxu0 %v2563_v26 }
  0xf5   :  { %v1900_v59 = vpop.f32.mrb[0].mxu1 }
  0xf6   :  { %v414_v61 = vpop.f32.mrb[1].mxu1 }
  0xf7   :  { %v1901_v63 = vpop.f32.mrb[2].mxu1 }
  0xf8   :  { %v416_v0 = vpop.f32.mrb[3].mxu1 }
 0x115   :  { %v1932_v2 = vpop.f32.mrb[16].mxu1 }
 0x116   :  { %v758_v3 = vadd.f32 %v1932_v2, %v1900_v59  ;;  %v750_v4 = vpop.f32.mrb[17].mxu1 }
 0x117   :  { %v1933_v5 = vpop.f32.mrb[18].mxu1 }
 0x118   :  { %v761_v6 = vadd.f32 %v1933_v5, %v1901_v63  ;;  %v752_v9 = vpop.f32.mrb[19].mxu1 }
 0x119   :  { %v753_v10 = vadd.f32 %v752_v9, %v416_v0  ;;  %v2217_v0 = vld [vmem:[%s2966_s8 + $0x10] sm:$0xff]  }
 0x11d   :  { %v1936_v11 = vpop.f32.mrb[4].mxu1 }
 0x11e   :  { %v765_v12 = vpop.f32.mrb[5].mxu1 }
 0x11f   :  { %v2665_v13 = vpop.f32.mrb[6].mxu1 }
 0x120   :  { %v768_v14 = vpop.f32.mrb[7].mxu1 }
 0x125   :  { %v2667_v17 = vpop.f32.mrb[8].mxu1 }
 0x126   :  { %v2669_v18 = vpop.f32.mrb[9].mxu1 }
 0x127   :  { %v2671_v20 = vpop.f32.mrb[10].mxu1 }
 0x128   :  { %v2673_v21 = vpop.f32.mrb[11].mxu1 }
 0x12d   :  { %v2675_v24 = vpop.f32.mrb[12].mxu1 }
 0x12e   :  { %v2677_v25 = vpop.f32.mrb[13].mxu1 }
 0x12f   :  { %v2679_v27 = vpop.f32.mrb[14].mxu1 }
 0x130   :  { %v2681_v28 = vpop.f32.mrb[15].mxu1 }
 0x135   :  { %v638_v29 = vpop.f32.mrb[0].mxu0 }
 0x136   :  { %v640_v31 = vpop.f32.mrb[1].mxu0 }
 0x137   :  { %v828_v32 = vadd.f32 %v753_v10, %v640_v31  ;;  %v642_v33 = vpop.f32.mrb[2].mxu0  ;;  %v2705_v31 = vld [vmem:[%s2967_s7 + $0x8] sm:$0xff]  }
 0x138   :  { %v644_v36 = vpop.f32.mrb[3].mxu0 }
 0x139   :  { %v813_v37 = vadd.f32 %v644_v36, %v638_v29  ;;  %v851_v38 = vadd.f32 %v2686_v35, %v828_v32  ;;  %v2218_v29 = vld [vmem:[%s2966_s8 + $0x18] sm:$0xff]  }
 0x13b   :  { %v829_v39 = vadd.f32 %v813_v37, %v758_v3  ;;  %v867_v45 = vmax.f32 %v851_v38, 0.0  ;;  %v2219_v37 = vld [vmem:[%s2966_s8 + $0x20] sm:$0xff]  }
 0x13d   :  { %v852_v40 = vadd.f32 %v2686_v35, %v829_v39  ;;  %v648_v42 = vpop.f32.mrb[4].mxu0 }
 0x13e   :  { %v650_v44 = vpop.f32.mrb[5].mxu0 }
 0x13f   :  { %v868_v46 = vmax.f32 %v852_v40, 0.0  ;;  %v814_v47 = vadd.f32 %v650_v44, %v642_v33  ;;  %v652_v48 = vpop.f32.mrb[6].mxu0 }
 0x140   :  { %v654_v49 = vpop.f32.mrb[7].mxu0 }
 0x141   :  { %v883_v51 = vpack.c.bf16 %v868_v46, %v867_v45  ;;  %v830_v53 = vadd.f32 %v814_v47, %v761_v6  ;;  %v815_v54 = vadd.f32 %v654_v49, %v648_v42  ;;  %v2222_v49 = vld [vmem:[%s2966_s8 + $0x28] sm:$0xff]  }
 0x143   :  { %v853_v56 = vadd.f32 %v2686_v35, %v830_v53  ;;  %v831_v59 = vadd.f32 %v815_v54, %v765_v12  ;;  %1084 = vmatmul.mubr.bf16.vlgmr.msra.gmra.mrb[20].mxu1 %v883_v51  ;;  %1962 = vmatprep.mubr.bf16.mxu0 %v883_v51  ;;  %v2729_v51 = vld [vmem:[%s2967_s7 + $0x18] sm:$0xff]  }
 0x144   :  { %1979 = vmatpush3.bf16.msra.mxu1 %v2214_v57  ;;  %1093 = vmatprep.mubr.bf16.mxu1 %v2231_v1 }
 0x145   :  { %v854_v61 = vadd.f32 %v2686_v35, %v831_v59  ;;  %v658_v63 = vpop.f32.mrb[8].mxu0  ;;  %1980 = vmatprep.subr.bf16.mxu1 %v2216_v55  ;;  %v869_v3 = vmax.f32 %v853_v56, 0.0  ;;  %v2225_v56 = vld [vmem:[%s2966_s8 + $0x30] sm:$0xff]  }
 0x146   :  { %v660_v2 = vpop.f32.mrb[9].mxu0 }
 0x147   :  { %v870_v4 = vmax.f32 %v854_v61, 0.0  ;;  %v816_v5 = vadd.f32 %v660_v2, %v652_v48  ;;  %v662_v6 = vpop.f32.mrb[10].mxu0 }
 0x148   :  { %v664_v9 = vpop.f32.mrb[11].mxu0  ;;  %1981 = vmatpush3.bf16.msra.mxu1 %v2216_v55 }
 0x149   :  { %v832_v10 = vadd.f32 %v816_v5, %v768_v14  ;;  %v817_v12 = vadd.f32 %v664_v9, %v658_v63  ;;  %v884_v57 = vpack.c.bf16 %v870_v4, %v869_v3  ;;  %1982 = vmatprep.subr.bf16.mxu1 %v2217_v0  ;;  %v2228_v9 = vld [vmem:[%s2966_s8 + $0x38] sm:$0xff]  }
 0x14b   :  { %v855_v32 = vadd.f32 %v2686_v35, %v832_v10  ;;  %v833_v33 = vadd.f32 %v1936_v11, %v817_v12  ;;  %1094 = vmatmul.mubr.bf16.gmra.mrb[24].mxu1 %v884_v57  ;;  %1963 = vmatmul.mubr.bf16.vlgmr.msra.gmra.mrb[32].mxu0 %v884_v57  ;;  %v2718_v11 = vld [vmem:[%s2967_s7 + $0x10] sm:$0xff]   ;;  %v2754_v10 = vld [vmem:[%s2967_s7 + $0x28] sm:$0xff]  }
 0x14c   :  { %1103 = vmatprep.mubr.bf16.mxu1 %v2231_v1  ;;  %1983 = vmatpush3.bf16.msra.mxu1 %v2217_v0 }
 0x14d   :  { %v856_v14 = vadd.f32 %v2686_v35, %v833_v33  ;;  %v668_v36 = vpop.f32.mrb[12].mxu0  ;;  %1984 = vmatprep.subr.bf16.mxu1 %v2218_v29  ;;  %2011 = vmatpush3.bf16.msra.mxu0 %v2662_v58  ;;  %v871_v39 = vmax.f32 %v855_v32, 0.0  ;;  %v2765_v33 = vld [vmem:[%s2967_s7 + $0x30] sm:$0xff]  }
 0x14e   :  { %v670_v38 = vpop.f32.mrb[13].mxu0  ;;  %2012 = vmatprep.subr.bf16.mxu0 %v2705_v31 }
 0x14f   :  { %v872_v40 = vmax.f32 %v856_v14, 0.0  ;;  %v818_v42 = vadd.f32 %v670_v38, %v662_v6  ;;  %v672_v44 = vpop.f32.mrb[14].mxu0 }
 0x150   :  { %v674_v45 = vpop.f32.mrb[15].mxu0  ;;  %1985 = vmatpush3.bf16.msra.mxu1 %v2218_v29 }
 0x151   :  { %v834_v46 = vadd.f32 %v2665_v13, %v818_v42  ;;  %v819_v47 = vadd.f32 %v674_v45, %v668_v36  ;;  %v885_v48 = vpack.c.bf16 %v872_v40, %v871_v39  ;;  %1986 = vmatprep.subr.bf16.mxu1 %v2219_v37  ;;  %2013 = vmatpush3.bf16.msra.mxu0 %v2705_v31 }
 0x152   :  { %2014 = vmatprep.subr.bf16.mxu0 %v2718_v11 }
 0x153   :  { %v857_v53 = vadd.f32 %v2686_v35, %v834_v46  ;;  %v835_v13 = vadd.f32 %v819_v47, %v2669_v18  ;;  %1104 = vmatmul.mubr.bf16.gmra.mrb[28].mxu1 %v885_v48  ;;  %1966 = vmatprep.mubr.bf16.mxu0 %v885_v48  ;;  %v2743_v18 = vld [vmem:[%s2967_s7 + $0x20] sm:$0xff]  }
 0x154   :  { %1113 = vmatprep.mubr.bf16.mxu1 %v2231_v1  ;;  %1987 = vmatpush3.bf16.msra.mxu1 %v2219_v37 }
 0x155   :  { %v858_v54 = vadd.f32 %v2686_v35, %v835_v13  ;;  %v678_v55 = vpop.f32.mrb[16].mxu0  ;;  %1988 = vmatprep.subr.bf16.mxu1 %v2222_v49  ;;  %2015 = vmatpush3.bf16.msra.mxu0 %v2718_v11  ;;  %v873_v61 = vmax.f32 %v857_v53, 0.0 }
 0x156   :  { %v680_v59 = vpop.f32.mrb[17].mxu0  ;;  %2016 = vmatprep.subr.bf16.mxu0 %v2729_v51 }
 0x157   :  { %v874_v63 = vmax.f32 %v858_v54, 0.0  ;;  %v820_v0 = vadd.f32 %v680_v59, %v672_v44  ;;  %v682_v2 = vpop.f32.mrb[18].mxu0  ;;  %v2774_v44 = vld [vmem:[%s2967_s7 + $0x38] sm:$0xff]  }
 0x158   :  { %v684_v3 = vpop.f32.mrb[19].mxu0  ;;  %1989 = vmatpush3.bf16.msra.mxu1 %v2222_v49 }
 0x159   :  { %v836_v4 = vadd.f32 %v820_v0, %v2673_v21  ;;  %v821_v5 = vadd.f32 %v684_v3, %v678_v55  ;;  %v886_v6 = vpack.c.bf16 %v874_v63, %v873_v61  ;;  %2017 = vmatpush3.bf16.msra.mxu0 %v2729_v51  ;;  %1990 = vmatprep.subr.bf16.mxu1 %v2225_v56 }
 0x15a   :  { %2018 = vmatprep.subr.bf16.mxu0 %v2743_v18 }
 0x15b   :  { %v859_v12 = vadd.f32 %v2686_v35, %v836_v4  ;;  %v837_v21 = vadd.f32 %v2667_v17, %v821_v5  ;;  %1114 = vmatmul.mubr.bf16.gmra.mrb[32].mxu1 %v886_v6  ;;  %1967 = vmatmul.mubr.bf16.gmra.mrb[36].mxu0 %v886_v6 }
 0x15c   :  { %1123 = vmatprep.mubr.bf16.mxu1 %v2231_v1  ;;  %1991 = vmatpush3.bf16.msra.mxu1 %v2225_v56 }
 0x15d   :  { %v860_v57 = vadd.f32 %v2686_v35, %v837_v21  ;;  %v688_v29 = vpop.f32.mrb[20].mxu0  ;;  %2019 = vmatpush3.bf16.msra.mxu0 %v2743_v18  ;;  %1992 = vmatprep.subr.bf16.mxu1 %v2228_v9  ;;  %v875_v17 = vmax.f32 %v859_v12, 0.0 }
 0x15e   :  { %v690_v32 = vpop.f32.mrb[21].mxu0  ;;  %2020 = vmatprep.subr.bf16.mxu0 %v2754_v10 }
 0x15f   :  { %v876_v14 = vmax.f32 %v860_v57, 0.0  ;;  %v822_v36 = vadd.f32 %v690_v32, %v682_v2  ;;  %v692_v37 = vpop.f32.mrb[22].mxu0 }
 0x160   :  { %v694_v38 = vpop.f32.mrb[23].mxu0  ;;  %1993 = vmatpush3.bf16.msra.mxu1 %v2228_v9 }
 0x161   :  { %v838_v39 = vadd.f32 %v2671_v20, %v822_v36  ;;  %v823_v40 = vadd.f32 %v694_v38, %v688_v29  ;;  %v887_v42 = vpack.c.bf16 %v876_v14, %v875_v17  ;;  %2021 = vmatpush3.bf16.msra.mxu0 %v2754_v10  ;;  %2042 = vmatprep.subr.bf16.mxu1 %v2662_v58 }
 0x162   :  { %2022 = vmatprep.subr.bf16.mxu0 %v2765_v33 }
 0x163   :  { %v861_v45 = vadd.f32 %v2686_v35, %v838_v39  ;;  %v839_v46 = vadd.f32 %v823_v40, %v2677_v25  ;;  %1124 = vmatmul.mubr.bf16.gmra.mrb[36].mxu1 %v887_v42  ;;  %1970 = vmatprep.mubr.bf16.mxu0 %v887_v42 }
 0x164   :  { %1133 = vmatprep.mubr.bf16.mxu1 %v2231_v1 }
 0x165   :  { %v862_v20 = vadd.f32 %v2686_v35, %v839_v46  ;;  %v698_v47 = vpop.f32.mrb[24].mxu0  ;;  %2023 = vmatpush3.bf16.msra.mxu0 %v2765_v33  ;;  %v877_v49 = vmax.f32 %v861_v45, 0.0 }
 0x166   :  { %v700_v48 = vpop.f32.mrb[25].mxu0  ;;  %2024 = vmatprep.subr.bf16.mxu0 %v2774_v44 }
 0x167   :  { %v878_v53 = vmax.f32 %v862_v20, 0.0  ;;  %v824_v13 = vadd.f32 %v700_v48, %v692_v37  ;;  %v702_v54 = vpop.f32.mrb[26].mxu0 }
 0x168   :  { %v704_v55 = vpop.f32.mrb[27].mxu0 }
 0x169   :  { %v840_v56 = vadd.f32 %v824_v13, %v2681_v28  ;;  %v825_v25 = vadd.f32 %v704_v55, %v698_v47  ;;  %v888_v59 = vpack.c.bf16 %v878_v53, %v877_v49  ;;  %2025 = vmatpush3.bf16.msra.mxu0 %v2774_v44 }
 0x16b   :  { %v863_v61 = vadd.f32 %v2686_v35, %v840_v56  ;;  %v841_v63 = vadd.f32 %v2675_v24, %v825_v25  ;;  %1134 = vmatmul.mubr.bf16.gmra.mrb[40].mxu1 %v888_v59  ;;  %1971 = vmatmul.mubr.bf16.gmra.mrb[40].mxu0 %v888_v59 }
 0x16c   :  { %1143 = vmatprep.mubr.bf16.mxu1 %v2231_v1 }
 0x16d   :  { %v864_v0 = vadd.f32 %v2686_v35, %v841_v63  ;;  %v708_v2 = vpop.f32.mrb[28].mxu0  ;;  %v879_v4 = vmax.f32 %v863_v61, 0.0 }
 0x16e   :  { %v710_v3 = vpop.f32.mrb[29].mxu0 }
 0x16f   :  { %v880_v5 = vmax.f32 %v864_v0, 0.0  ;;  %v826_v6 = vadd.f32 %v710_v3, %v702_v54  ;;  %v712_v28 = vpop.f32.mrb[30].mxu0 }
 0x170   :  { %v713_v9 = vpop.f32.mrb[31].mxu0 }
 0x171   :  { %v842_v12 = vadd.f32 %v2679_v27, %v826_v6  ;;  %v827_v21 = vadd.f32 %v713_v9, %v708_v2  ;;  %v889_v57 = vpack.c.bf16 %v880_v5, %v879_v4 }
 0x173   :  { %v865_v29 = vadd.f32 %v2686_v35, %v842_v12  ;;  %v866_v24 = vadd.f32 %v2686_v35, %v827_v21  ;;  %1144 = vmatmul.mubr.bf16.gmra.mrb[44].mxu1 %v889_v57  ;;  %1974 = vmatprep.mubr.bf16.mxu0 %v889_v57 }
 0x174   :  { %1153 = vmatprep.mubr.bf16.mxu1 %v2231_v1 }
 0x175   :  { %v881_v32 = vmax.f32 %v865_v29, 0.0  ;;  %v882_v17 = vmax.f32 %v866_v24, 0.0 }
 0x177   :  { %v890_v14 = vpack.c.bf16 %v882_v17, %v881_v32 }
 0x179   :  { %1975 = vmatmul.mubr.bf16.gmra.mrb[44].mxu0 %v890_v14 }
 0x17a   :  { %2026 = vmatprep.mubr.bf16.mxu0 %v2476_v62 }
 0x17b   :  { %1154 = vmatmul.mubr.bf16.gmra.mrb[48].mxu1 %v890_v14 }
 0x17c   :  { %1994 = vmatprep.mubr.bf16.mxu1 %v2342_v19 }
 0x181   :  { %2027 = vmatmul.mubr.bf16.vlgmr.msra.gmra.mrb[48].mxu0 %v2503_v7 }
 0x182   :  { %2030 = vmatprep.mubr.bf16.mxu0 %v2505_v8 }
 0x183   :  { %1995 = vmatmul.mubr.bf16.vlgmr.msra.gmra.mrb[52].mxu1 %v2375_v30 }
 0x184   :  { %2050 = vmatpush3.bf16.msra.mxu1 %v2662_v58  ;;  %1998 = vmatprep.mubr.bf16.mxu1 %v2386_v34 }
 0x185   :  { %2043 = vmatprep.subr.bf16.mxu1 %v2705_v31 }
 0x188   :  { %2051 = vmatpush3.bf16.msra.mxu1 %v2705_v31 }
 0x189   :  { %2044 = vmatprep.subr.bf16.mxu1 %v2718_v11  ;;  %2031 = vmatmul.mubr.bf16.gmra.mrb[52].mxu0 %v2529_v15 }
 0x18b   :  { %1999 = vmatmul.mubr.bf16.gmra.mrb[56].mxu1 %v2410_v41 }
 0x18c   :  { %2052 = vmatpush3.bf16.msra.mxu1 %v2718_v11  ;;  %2002 = vmatprep.mubr.bf16.mxu1 %v2415_v43 }
 0x18d   :  { %2045 = vmatprep.subr.bf16.mxu1 %v2729_v51 }
 0x190   :  { %2053 = vmatpush3.bf16.msra.mxu1 %v2729_v51 }
 0x191   :  { %2046 = vmatprep.subr.bf16.mxu1 %v2743_v18 }
 0x193   :  { %2003 = vmatmul.mubr.bf16.gmra.mrb[60].mxu1 %v2439_v50 }
 0x194   :  { %2054 = vmatpush3.bf16.msra.mxu1 %v2743_v18  ;;  %2006 = vmatprep.mubr.bf16.mxu1 %v2444_v52 }
 0x195   :  { %2047 = vmatprep.subr.bf16.mxu1 %v2754_v10 }
 0x198   :  { %2055 = vmatpush3.bf16.msra.mxu1 %v2754_v10 }
 0x199   :  { %2048 = vmatprep.subr.bf16.mxu1 %v2765_v33 }
 0x19b   :  { %2007 = vmatmul.mubr.bf16.gmra.mrb[64].mxu1 %v2471_v60 }
 0x19c   :  { %2056 = vmatpush3.bf16.msra.mxu1 %v2765_v33  ;;  %2034 = vmatprep.mubr.bf16.mxu1 %v2531_v16 }
 0x19d   :  { %2049 = vmatprep.subr.bf16.mxu1 %v2774_v44 }
 0x1a0   :  { %2057 = vmatpush3.bf16.msra.mxu1 %v2774_v44 }
 0x1a3   :  { %2035 = vmatmul.mubr.bf16.vlgmr.msra.gmra.mrb[60].mxu1 %v2549_v22 }
 0x1a4   :  { %2038 = vmatprep.mubr.bf16.mxu1 %v2551_v23 }
 0x1ab   :  { %2039 = vmatmul.mubr.bf16.gmra.mrb[64].mxu1 %v2563_v26 }
 0x216   :  { %v1085_v1 = vpop.f32.mrb[20].mxu1 }
 0x217   :  { %v1087_v19 = vpop.f32.mrb[21].mxu1 }
 0x218   :  { %v1089_v30 = vpop.f32.mrb[22].mxu1 }
 0x219   :  { %v1091_v34 = vpop.f32.mrb[23].mxu1 }
 0x21a   :  { %v1260_v41 = vadd.f32 %v1091_v34, %v1085_v1 }
 0x21e   :  { %v1095_v43 = vpop.f32.mrb[24].mxu1  ;;  %v1964_v50 = vpop.f32.mrb[32].mxu0 }
 0x21f   :  { %v2823_v52 = vadd.f32 %v1964_v50, %v1260_v41  ;;  %v1097_v60 = vpop.f32.mrb[25].mxu1  ;;  %v1197_v62 = vpop.f32.mrb[33].mxu0 }
 0x220   :  { %v1261_v7 = vadd.f32 %v1097_v60, %v1089_v30  ;;  %v1099_v8 = vpop.f32.mrb[26].mxu1  ;;  %v1965_v15 = vpop.f32.mrb[34].mxu0 }
 0x221   :  { %v1101_v16 = vpop.f32.mrb[27].mxu1  ;;  %v1199_v22 = vpop.f32.mrb[35].mxu0 }
 0x222   :  { %v2825_v58 = vadd.f32 %v1965_v15, %v1261_v7  ;;  %v1262_v23 = vadd.f32 %v1101_v16, %v1095_v43  ;;  %v2827_v26 = vadd.f32 %v1199_v22, %v1087_v19 }
 0x226   :  { %v1105_v27 = vpop.f32.mrb[28].mxu1 }
 0x227   :  { %v1107_v35 = vpop.f32.mrb[29].mxu1 }
 0x228   :  { %v1263_v31 = vadd.f32 %v1107_v35, %v1099_v8  ;;  %v1109_v11 = vpop.f32.mrb[30].mxu1 }
 0x229   :  { %v1111_v51 = vpop.f32.mrb[31].mxu1 }
 0x22a   :  { %v1264_v18 = vadd.f32 %v1111_v51, %v1105_v27 }
 0x22e   :  { %v1115_v10 = vpop.f32.mrb[32].mxu1  ;;  %v1968_v33 = vpop.f32.mrb[36].mxu0 }
 0x22f   :  { %v2829_v36 = vadd.f32 %v1968_v33, %v1264_v18  ;;  %v1117_v37 = vpop.f32.mrb[33].mxu1  ;;  %v1212_v38 = vpop.f32.mrb[37].mxu0  ;;  %v2863_v33 = vld [vmem:[%s2970_s6] ss:$0 sm:$0xff] }
 0x230   :  { %v1265_v39 = vadd.f32 %v1117_v37, %v1109_v11  ;;  %v2831_v40 = vadd.f32 %v1262_v23, %v1212_v38  ;;  %v1119_v42 = vpop.f32.mrb[34].mxu1  ;;  %v1969_v44 = vpop.f32.mrb[38].mxu0 }
 0x231   :  { %v1121_v45 = vpop.f32.mrb[35].mxu1  ;;  %v1215_v46 = vpop.f32.mrb[39].mxu0 }
 0x232   :  { %v2833_v20 = vadd.f32 %v1969_v44, %v1265_v39  ;;  %v1266_v47 = vadd.f32 %v1121_v45, %v1115_v10  ;;  %v2835_v48 = vadd.f32 %v1263_v31, %v1215_v46  ;;  %v2858_v31 = vld [vmem:[%s2969_s9] ss:$0 sm:$0xff]  ;;  %v1300_v39 = vadd.f32 %v2863_v33, %v2825_v58 }
 0x233   :  { %v1298_v46 = vadd.f32 %v2863_v33, %v2827_v26 }
 0x236   :  { %v1125_v49 = vpop.f32.mrb[36].mxu1 }
 0x237   :  { %v1127_v53 = vpop.f32.mrb[37].mxu1 }
 0x238   :  { %v1267_v13 = vadd.f32 %v1127_v53, %v1119_v42  ;;  %v1129_v54 = vpop.f32.mrb[38].mxu1  ;;  %v1301_v53 = vadd.f32 %v2863_v33, %v2831_v40 }
 0x239   :  { %v1131_v55 = vpop.f32.mrb[39].mxu1 }
 0x23a   :  { %v1268_v56 = vadd.f32 %v1131_v55, %v1125_v49  ;;  %v1299_v55 = vadd.f32 %v2863_v33, %v2823_v52 }
 0x23e   :  { %v1135_v25 = vpop.f32.mrb[40].mxu1  ;;  %v1972_v59 = vpop.f32.mrb[40].mxu0 }
 0x23f   :  { %v2837_v61 = vadd.f32 %v1972_v59, %v1268_v56  ;;  %v1137_v63 = vpop.f32.mrb[41].mxu1  ;;  %v1228_v0 = vpop.f32.mrb[41].mxu0 }
 0x240   :  { %v1269_v2 = vadd.f32 %v1137_v63, %v1129_v54  ;;  %v2839_v3 = vadd.f32 %v1266_v47, %v1228_v0  ;;  %v1139_v4 = vpop.f32.mrb[42].mxu1  ;;  %v1973_v5 = vpop.f32.mrb[42].mxu0 }
 0x241   :  { %v1141_v6 = vpop.f32.mrb[43].mxu1  ;;  %v1231_v28 = vpop.f32.mrb[43].mxu0 }
 0x242   :  { %v2841_v9 = vadd.f32 %v1973_v5, %v1269_v2  ;;  %v1270_v12 = vadd.f32 %v1141_v6, %v1135_v25  ;;  %v2843_v21 = vadd.f32 %v1267_v13, %v1231_v28 }
 0x246   :  { %v1145_v57 = vpop.f32.mrb[44].mxu1 }
 0x247   :  { %v1147_v29 = vpop.f32.mrb[45].mxu1 }
 0x248   :  { %v1271_v24 = vadd.f32 %v1147_v29, %v1139_v4  ;;  %v1149_v32 = vpop.f32.mrb[46].mxu1 }
 0x249   :  { %v1151_v17 = vpop.f32.mrb[47].mxu1 }
 0x24a   :  { %v1272_v14 = vadd.f32 %v1151_v17, %v1145_v57 }
 0x24c   :  { %v1976_v1 = vpop.f32.mrb[44].mxu0 }
 0x24d   :  { %v2845_v19 = vadd.f32 %v1976_v1, %v1272_v14  ;;  %v1244_v30 = vpop.f32.mrb[45].mxu0  ;;  %v1302_v1 = vadd.f32 %v2863_v33, %v2835_v48 }
 0x24e   :  { %v2847_v34 = vadd.f32 %v1270_v12, %v1244_v30  ;;  %v1155_v41 = vpop.f32.mrb[48].mxu1  ;;  %v1977_v43 = vpop.f32.mrb[46].mxu0 }
 0x24f   :  { %v1157_v50 = vpop.f32.mrb[49].mxu1  ;;  %v1247_v60 = vpop.f32.mrb[47].mxu0 }
 0x250   :  { %v1273_v62 = vadd.f32 %v1157_v50, %v1149_v32  ;;  %v2849_v7 = vadd.f32 %v1271_v24, %v1247_v60  ;;  %v1159_v8 = vpop.f32.mrb[50].mxu1  ;;  %v1304_v24 = vadd.f32 %v2863_v33, %v2833_v20  ;;  %v1305_v20 = vadd.f32 %v2863_v33, %v2839_v3 }
 0x251   :  { %v1160_v15 = vpop.f32.mrb[51].mxu1  ;;  %v1303_v60 = vadd.f32 %v2863_v33, %v2829_v36 }
 0x252   :  { %v2851_v16 = vadd.f32 %v1977_v43, %v1273_v62  ;;  %v2853_v22 = vadd.f32 %v1160_v15, %v1155_v41 }
 0x254   :  { %v2028_v23 = vpop.f32.mrb[48].mxu0 }
 0x255   :  { %v1573_v27 = vpop.f32.mrb[49].mxu0 }
 0x256   :  { %v1996_v35 = vpop.f32.mrb[52].mxu1  ;;  %v2029_v11 = vpop.f32.mrb[50].mxu0 }
 0x257   :  { %v1582_v51 = vadd.f32 %v2028_v23, %v1996_v35  ;;  %v1428_v18 = vpop.f32.mrb[53].mxu1  ;;  %v1576_v10 = vpop.f32.mrb[51].mxu0 }
 0x258   :  { %v1574_v37 = vadd.f32 %v1573_v27, %v1428_v18  ;;  %v1997_v38 = vpop.f32.mrb[54].mxu1 }
 0x259   :  { %v1645_v42 = vadd.f32 %v2858_v31, %v1582_v51  ;;  %v1585_v44 = vadd.f32 %v2029_v11, %v1997_v38  ;;  %v1431_v45 = vpop.f32.mrb[55].mxu1  ;;  %v1308_v11 = vadd.f32 %v2863_v33, %v2841_v9 }
 0x25a   :  { %v1643_v47 = vadd.f32 %v2858_v31, %v1574_v37  ;;  %v1577_v49 = vadd.f32 %v1576_v10, %v1431_v45  ;;  %v1306_v10 = vadd.f32 %v2863_v33, %v2843_v21 }
 0x25b   :  { %v1661_v13 = vadd.f32 %v1645_v42, %v1300_v39  ;;  %v1646_v54 = vadd.f32 %v2858_v31, %v1585_v44  ;;  %v1309_v39 = vadd.f32 %v2863_v33, %v2847_v34 }
 0x25c   :  { %v1659_v58 = vadd.f32 %v1643_v47, %v1298_v46  ;;  %v1644_v56 = vadd.f32 %v2858_v31, %v1577_v49  ;;  %v2032_v25 = vpop.f32.mrb[52].mxu0  ;;  %v1307_v46 = vadd.f32 %v2863_v33, %v2837_v61  ;;  %v1312_v61 = vadd.f32 %v2863_v33, %v2851_v16 }
 0x25d   :  { %v1677_v59 = vmax.f32 %v1661_v13, 0.0  ;;  %v1662_v63 = vadd.f32 %v1646_v54, %v1301_v53  ;;  %v1589_v0 = vpop.f32.mrb[53].mxu0 }
 0x25e   :  { %v1675_v26 = vmax.f32 %v1659_v58, 0.0  ;;  %v1660_v2 = vadd.f32 %v1644_v56, %v1299_v55  ;;  %v2000_v4 = vpop.f32.mrb[56].mxu1  ;;  %v2033_v5 = vpop.f32.mrb[54].mxu0 }
 0x25f   :  { %1693 = vst [vmem:[%s2971_s10 + $0x10] sm:$0xff] %v1677_v59  ;;  %v1678_v40 = vmax.f32 %v1662_v63, 0.0  ;;  %v1598_v6 = vadd.f32 %v2032_v25, %v2000_v4  ;;  %v1444_v28 = vpop.f32.mrb[57].mxu1  ;;  %v1592_v12 = vpop.f32.mrb[55].mxu0  ;;  %v1310_v25 = vadd.f32 %v2863_v33, %v2849_v7  ;;  %v1311_v4 = vadd.f32 %v2863_v33, %v2845_v19 }
 0x260   :  { %1691 = vst [vmem:[%s2971_s10] sm:$0xff] %v1675_v26  ;;  %v1676_v52 = vmax.f32 %v1660_v2, 0.0  ;;  %v1590_v57 = vadd.f32 %v1589_v0, %v1444_v28  ;;  %v2001_v29 = vpop.f32.mrb[58].mxu1  ;;  %v1313_v0 = vadd.f32 %v2863_v33, %v2853_v22 }
 0x261   :  { %1694 = vst [vmem:[%s2971_s10 + $0x18] sm:$0xff] %v1678_v40  ;;  %v1649_v32 = vadd.f32 %v2858_v31, %v1598_v6  ;;  %v1601_v17 = vadd.f32 %v2033_v5, %v2001_v29  ;;  %v1447_v14 = vpop.f32.mrb[59].mxu1 }
 0x262   :  { %1692 = vst [vmem:[%s2971_s10 + $0x8] sm:$0xff] %v1676_v52  ;;  %v1647_v30 = vadd.f32 %v2858_v31, %v1590_v57  ;;  %v1593_v41 = vadd.f32 %v1592_v12, %v1447_v14 }
 0x263   :  { %v1665_v43 = vadd.f32 %v1649_v32, %v1304_v24  ;;  %v1650_v50 = vadd.f32 %v2858_v31, %v1601_v17 }
 0x264   :  { %v1663_v62 = vadd.f32 %v1647_v30, %v1302_v1  ;;  %v1648_v8 = vadd.f32 %v2858_v31, %v1593_v41 }
 0x265   :  { %v1681_v48 = vmax.f32 %v1665_v43, 0.0  ;;  %v1666_v15 = vadd.f32 %v1650_v50, %v1305_v20 }
 0x266   :  { %v1679_v23 = vmax.f32 %v1663_v62, 0.0  ;;  %v1664_v27 = vadd.f32 %v1648_v8, %v1303_v60 }
 0x267   :  { %1697 = vst [vmem:[%s2971_s10 + $0x30] sm:$0xff] %v1681_v48  ;;  %v1682_v35 = vmax.f32 %v1666_v15, 0.0 }
 0x268   :  { %1695 = vst [vmem:[%s2971_s10 + $0x20] sm:$0xff] %v1679_v23  ;;  %v1680_v3 = vmax.f32 %v1664_v27, 0.0 }
 0x269   :  { %1698 = vst [vmem:[%s2971_s10 + $0x38] sm:$0xff] %v1682_v35 }
 0x26a   :  { %1696 = vst [vmem:[%s2971_s10 + $0x28] sm:$0xff] %v1680_v3 }
 0x276   :  { %v2036_v36 = vpop.f32.mrb[60].mxu1 }
 0x277   :  { %v1653_v51 = vadd.f32 %v2036_v36, %v2858_v31  ;;  %v1605_v18 = vpop.f32.mrb[61].mxu1 }
 0x278   :  { %v1651_v37 = vadd.f32 %v2858_v31, %v1605_v18  ;;  %v2037_v38 = vpop.f32.mrb[62].mxu1 }
 0x279   :  { %v1669_v42 = vadd.f32 %v1653_v51, %v1308_v11  ;;  %v1654_v44 = vadd.f32 %v2037_v38, %v2858_v31  ;;  %v1608_v45 = vpop.f32.mrb[63].mxu1 }
 0x27a   :  { %v1667_v9 = vadd.f32 %v1651_v37, %v1306_v10  ;;  %v1652_v47 = vadd.f32 %v2858_v31, %v1608_v45 }
 0x27b   :  { %v1685_v49 = vmax.f32 %v1669_v42, 0.0  ;;  %v1670_v53 = vadd.f32 %v1654_v44, %v1309_v39 }
 0x27c   :  { %v1683_v13 = vmax.f32 %v1667_v9, 0.0  ;;  %v1668_v21 = vadd.f32 %v1652_v47, %v1307_v46 }
 0x27d   :  { %1701 = vst [vmem:[%s2971_s10 + $0x50] sm:$0xff] %v1685_v49  ;;  %v1686_v54 = vmax.f32 %v1670_v53, 0.0 }
 0x27e   :  { %1699 = vst [vmem:[%s2971_s10 + $0x40] sm:$0xff] %v1683_v13  ;;  %v1684_v34 = vmax.f32 %v1668_v21, 0.0  ;;  %v2040_v55 = vpop.f32.mrb[64].mxu1 }
 0x27f   :  { %1702 = vst [vmem:[%s2971_s10 + $0x58] sm:$0xff] %v1686_v54  ;;  %v1657_v58 = vadd.f32 %v2040_v55, %v2858_v31  ;;  %v1621_v56 = vpop.f32.mrb[65].mxu1 }
 0x280   :  { %1700 = vst [vmem:[%s2971_s10 + $0x48] sm:$0xff] %v1684_v34  ;;  %v1655_v59 = vadd.f32 %v2858_v31, %v1621_v56  ;;  %v2041_v63 = vpop.f32.mrb[66].mxu1 }
 0x281   :  { %v1673_v26 = vadd.f32 %v1657_v58, %v1312_v61  ;;  %v1658_v2 = vadd.f32 %v2041_v63, %v2858_v31  ;;  %v1624_v16 = vpop.f32.mrb[67].mxu1 }
 0x282   :  { %v1671_v5 = vadd.f32 %v1655_v59, %v1310_v25  ;;  %v1656_v7 = vadd.f32 %v2858_v31, %v1624_v16 }
 0x283   :  { %v1689_v40 = vmax.f32 %v1673_v26, 0.0  ;;  %v1674_v6 = vadd.f32 %v1658_v2, %v1313_v0 }
 0x284   :  { %v1687_v28 = vmax.f32 %v1671_v5, 0.0  ;;  %v1672_v12 = vadd.f32 %v1656_v7, %v1311_v4 }
 0x285   :  { %1705 = vst [vmem:[%s2971_s10 + $0x70] sm:$0xff] %v1689_v40  ;;  %v1690_v52 = vmax.f32 %v1674_v6, 0.0 }
 0x286   :  { %1703 = vst [vmem:[%s2971_s10 + $0x60] sm:$0xff] %v1687_v28  ;;  %v1688_v22 = vmax.f32 %v1672_v12, 0.0 }
 0x287   :  { %1706 = vst [vmem:[%s2971_s10 + $0x78] sm:$0xff] %v1690_v52 }
 0x288   :  { %1704 = vst [vmem:[%s2971_s10 + $0x68] sm:$0xff] %v1688_v22 }

</bundles_post_ra>
